<compile_context>
chip_gen: v5e
topology: v5e:2x2
jax: 0.10.0
libtpu: 0.0.40
codegen_flags: <defaults>
</compile_context>

<pallas_src>
import functools

import jax
import jax.numpy as jnp
from jax.experimental import pallas as pl
from jax.experimental.pallas import tpu as pltpu

LANE = 128  # TPU lane width; channel / K axes are padded to a multiple of this.


# ----------------------------- Pallas kernels ------------------------------

def _matmul_stats_kernel(x_ref, w_ref, y_ref, sum_ref, sq_ref):
    """y = x @ w (bf16 operands, f32 MXU accumulation) + fused BN partials.

    x_ref : (tm, K)      bf16   folded-tap conv patches (row tile)
    w_ref : (K, CoutP)   bf16   folded conv weights
    y_ref : (tm, CoutP)  bf16   conv output tile
    sum_ref / sq_ref : (1, 1, CoutP) f32  per-tile per-channel sum / sum(y^2)
    """
    acc = jnp.dot(x_ref[...], w_ref[...], preferred_element_type=jnp.float32)
    y_ref[...] = acc.astype(y_ref.dtype)
    # BN statistic partials from the LOCAL accumulator (no Ref re-read).
    sum_ref[...] = jnp.sum(acc, axis=0, keepdims=True)[None]
    sq_ref[...] = jnp.sum(acc * acc, axis=0, keepdims=True)[None]


def _conv3x3_phase_kernel(ph_ref, w_ref, y_ref, sum_ref, sq_ref,
                          *, ksize, stride, Ho, Wo):
    """Polyphase 9-tap fallback (large Cin): one image per grid step.

    All 9 taps accumulate into a LOCAL f32 value (single Ref write at the end),
    and the BN partials come from that local value.  The per-tap window slice +
    reshape still materializes a small VMEM copy; acceptable on this fallback
    path (the folded-tap kernel above is used whenever 9*Cin <= 128).
    """
    acc = jnp.zeros((Ho * Wo, y_ref.shape[-1]), jnp.float32)
    for di in range(ksize):
        for dj in range(ksize):
            p = (di % stride) * stride + (dj % stride)   # phase index
            oi, oj = di // stride, dj // stride           # unit-stride offsets
            xt = ph_ref[p, oi:oi + Ho, oj:oj + Wo, :]     # (Ho, Wo, CinP) bf16
            acc += jnp.dot(xt.reshape(Ho * Wo, xt.shape[-1]),
                           w_ref[di * ksize + dj],
                           preferred_element_type=jnp.float32)
    y_ref[...] = acc.astype(y_ref.dtype)
    sum_ref[...] = jnp.sum(acc, axis=0, keepdims=True)[None]
    sq_ref[...] = jnp.sum(acc * acc, axis=0, keepdims=True)[None]


def _bn_relu_kernel(y_ref, scale_ref, shift_ref, o_ref):
    # o = relu(y * scale + shift)   (f32 math, bf16 in/out)
    v = y_ref[...].astype(jnp.float32) * scale_ref[...] + shift_ref[...]
    o_ref[...] = jnp.maximum(v, 0.0).astype(o_ref.dtype)


def _skip_conv_bn_add_relu_kernel(y2_ref, xs_ref, w3_ref, b3_ref,
                                  scale_ref, shift_ref, o_ref):
    # o = relu(y2 * scale + shift + (xs @ w3 + b3))   -- fused epilogue
    res = jnp.dot(xs_ref[...], w3_ref[...],
                  preferred_element_type=jnp.float32) + b3_ref[...]
    v = y2_ref[...].astype(jnp.float32) * scale_ref[...] + shift_ref[...] + res
    o_ref[...] = jnp.maximum(v, 0.0)


def _bn_add_relu_kernel(y2_ref, res_ref, scale_ref, shift_ref, o_ref):
    # o = relu(y2 * scale + shift + residual)   (identity skip, f32 residual)
    v = (y2_ref[...].astype(jnp.float32) * scale_ref[...] + shift_ref[...]
         + res_ref[...])
    o_ref[...] = jnp.maximum(v, 0.0)


# ----------------------------- Pallas wrappers ------------------------------

def matmul_stats(x, w, tm):
    """x: (M_pad, K) bf16, w: (K, CoutP) bf16 -> conv output + BN partials.

    Row-parallel grid (megacore-shardable on v7x).  Per-step VMEM is
    ~(tm*K + K*C)*2B + tm*C*(2B out + 4B f32 acc): well under v7x's 64 MiB
    total / 32 MiB scoped default even double-buffered.  For real channel
    counts tile K/N in 256-wide chunks to fill v6e/v7x's 256x256 MXU.
    """
    Mp, K = x.shape
    C = w.shape[1]
    nb = Mp // tm
    return pl.pallas_call(
        _matmul_stats_kernel,
        out_shape=(jax.ShapeDtypeStruct((Mp, C), jnp.bfloat16),
                   jax.ShapeDtypeStruct((nb, 1, C), jnp.float32),
                   jax.ShapeDtypeStruct((nb, 1, C), jnp.float32)),
        grid=(nb,),
        in_specs=[pl.BlockSpec((tm, K), lambda i: (i, 0)),
                  pl.BlockSpec((K, C), lambda i: (0, 0))],
        out_specs=(pl.BlockSpec((tm, C), lambda i: (i, 0)),
                   pl.BlockSpec((1, 1, C), lambda i: (i, 0, 0)),
                   pl.BlockSpec((1, 1, C), lambda i: (i, 0, 0))),
        compiler_params=pltpu.CompilerParams(
            dimension_semantics=("parallel",)),
    )(x, w)


def conv3x3_phases(x_nhwc, w_oihw, stride, Ho, Wo):
    """Polyphase 9-tap conv fallback for 9*Cin > 128 (one image / grid step)."""
    N, H, W, Cin = x_nhwc.shape
    Cout = w_oihw.shape[0]
    CinP = _round_up(Cin, LANE)
    CoutP = _round_up(Cout, LANE)
    phases, _ = to_phases(_pad_last(x_nhwc, CinP).astype(jnp.bfloat16),
                          3, stride, 1)
    w_taps = conv_w_taps(w_oihw, CinP, CoutP)
    ss = stride * stride
    _, Hr, Wr, _ = phases.shape
    kernel = functools.partial(_conv3x3_phase_kernel,
                               ksize=3, stride=stride, Ho=Ho, Wo=Wo)
    return pl.pallas_call(
        kernel,
        out_shape=(jax.ShapeDtypeStruct((N * Ho * Wo, CoutP), jnp.bfloat16),
                   jax.ShapeDtypeStruct((N, 1, CoutP), jnp.float32),
                   jax.ShapeDtypeStruct((N, 1, CoutP), jnp.float32)),
        grid=(N,),
        in_specs=[pl.BlockSpec((ss, Hr, Wr, CinP), lambda n: (n, 0, 0, 0)),
                  pl.BlockSpec((9, CinP, CoutP), lambda n: (0, 0, 0))],
        out_specs=(pl.BlockSpec((Ho * Wo, CoutP), lambda n: (n, 0)),
                   pl.BlockSpec((1, 1, CoutP), lambda n: (n, 0, 0)),
                   pl.BlockSpec((1, 1, CoutP), lambda n: (n, 0, 0))),
        compiler_params=pltpu.CompilerParams(
            dimension_semantics=("parallel",)),
    )(phases, w_taps)


def bn_relu(y, scale, shift, tm):
    Mp, C = y.shape
    return pl.pallas_call(
        _bn_relu_kernel,
        out_shape=jax.ShapeDtypeStruct((Mp, C), jnp.bfloat16),
        grid=(Mp // tm,),
        in_specs=[pl.BlockSpec((tm, C), lambda i: (i, 0)),
                  pl.BlockSpec((1, C), lambda i: (0, 0)),
                  pl.BlockSpec((1, C), lambda i: (0, 0))],
        out_specs=pl.BlockSpec((tm, C), lambda i: (i, 0)),
        compiler_params=pltpu.CompilerParams(
            dimension_semantics=("parallel",)),
    )(y, scale, shift)


def skip_conv_bn_add_relu(y2, xs, w3, b3, scale, shift, tm):
    Mp, C = y2.shape
    K = xs.shape[1]
    return pl.pallas_call(
        _skip_conv_bn_add_relu_kernel,
        out_shape=jax.ShapeDtypeStruct((Mp, C), jnp.float32),
        grid=(Mp // tm,),
        in_specs=[pl.BlockSpec((tm, C), lambda i: (i, 0)),
                  pl.BlockSpec((tm, K), lambda i: (i, 0)),
                  pl.BlockSpec((K, C), lambda i: (0, 0)),
                  pl.BlockSpec((1, C), lambda i: (0, 0)),
                  pl.BlockSpec((1, C), lambda i: (0, 0)),
                  pl.BlockSpec((1, C), lambda i: (0, 0))],
        out_specs=pl.BlockSpec((tm, C), lambda i: (i, 0)),
        compiler_params=pltpu.CompilerParams(
            dimension_semantics=("parallel",)),
    )(y2, xs, w3, b3, scale, shift)


def bn_add_relu(y2, res, scale, shift, tm):
    Mp, C = y2.shape
    return pl.pallas_call(
        _bn_add_relu_kernel,
        out_shape=jax.ShapeDtypeStruct((Mp, C), jnp.float32),
        grid=(Mp // tm,),
        in_specs=[pl.BlockSpec((tm, C), lambda i: (i, 0)),
                  pl.BlockSpec((tm, C), lambda i: (i, 0)),
                  pl.BlockSpec((1, C), lambda i: (0, 0)),
                  pl.BlockSpec((1, C), lambda i: (0, 0))],
        out_specs=pl.BlockSpec((tm, C), lambda i: (i, 0)),
        compiler_params=pltpu.CompilerParams(
            dimension_semantics=("parallel",)),
    )(y2, res, scale, shift)


# ------------------------------ JAX-side glue -------------------------------

def _round_up(x, m):
    return ((x + m - 1) // m) * m


def _pad_last(a, target):
    d = target - a.shape[-1]
    return a if d == 0 else jnp.pad(a, [(0, 0)] * (a.ndim - 1) + [(0, d)])


def _row_tile(m):
    # Row tile for the M (= N*Ho*Wo) axis: never below 256 rows (tiny tiles
    # cost 3x+ on memory-bound passes), capped at 512 so double-buffered bf16
    # (tm, 128) blocks + f32 accumulators leave wide headroom inside v7x's
    # 64 MiB VMEM (32 MiB scoped default).
    return min(512, _round_up(max(m, 1), 256))


def _extract_patches(x_nhwc, ksize, stride, pad):
    """(N,H,W,C) -> (N,Ho,Wo,ksize*ksize*C): shifted windows stacked along the
    channel axis (tap-major, channel-fastest) to match the folded weight layout."""
    N, H, W, C = x_nhwc.shape
    Ho = (H + 2 * pad - ksize) // stride + 1
    Wo = (W + 2 * pad - ksize) // stride + 1
    xp = jnp.pad(x_nhwc, ((0, 0), (pad, pad), (pad, pad), (0, 0)))
    cols = []
    for di in range(ksize):
        for dj in range(ksize):
            cols.append(xp[:, di:di + (Ho - 1) * stride + 1:stride,
                           dj:dj + (Wo - 1) * stride + 1:stride, :])
    return jnp.concatenate(cols, axis=-1)


def to_phases(x_nhwc, ksize, stride, pad):
    """Zero-inflation polyphase (space-to-depth) view of the padded input:
    (N*stride^2, Hr, Wr, C), batch-major phase order.  Tap (di, dj) of a
    stride-s conv maps to phase (di%s, dj%s) with window offset (di//s, dj//s)."""
    N, H, W, C = x_nhwc.shape
    Ho = (H + 2 * pad - ksize) // stride + 1
    Wo = (W + 2 * pad - ksize) // stride + 1
    Hr = Ho + (ksize - 1) // stride
    Wr = Wo + (ksize - 1) // stride
    ph_h = Hr * stride - H - pad
    ph_w = Wr * stride - W - pad
    assert ph_h >= 0 and ph_w >= 0
    xp = jnp.pad(x_nhwc, ((0, 0), (pad, ph_h), (pad, ph_w), (0, 0)))
    ph = xp.reshape(N, Hr, stride, Wr, stride, C)
    ph = jnp.transpose(ph, (0, 2, 4, 1, 3, 5))            # (N, s, s, Hr, Wr, C)
    return ph.reshape(N * stride * stride, Hr, Wr, C), (Ho, Wo)


def conv_w_taps(w_oihw, cin_pad, cout_pad):
    """PyTorch (Cout, Cin, kh, kw) -> (kh*kw, CinP, CoutP) bf16, tap-major."""
    co, ci, kh, kw = w_oihw.shape
    wt = jnp.transpose(w_oihw, (2, 3, 1, 0)).reshape(kh * kw, ci, co)
    wt = jnp.pad(wt, ((0, 0), (0, cin_pad - ci), (0, cout_pad - co)))
    return wt.astype(jnp.bfloat16)


def conv3x3(x_nhwc, w_oihw, stride):
    """3x3 conv (padding 1, no bias) + fused per-channel BN sum / sum-of-squares.

    Returns (y, ssum, ssq, (Ho, Wo, M, M_pad, tm)): y is (M_pad, CoutP) bf16 in
    (n, ho, wo)-row-major order (rows >= M come from zero-padded patch rows and
    are sliced off by the caller); ssum/ssq are f32 over the M real positions.
    """
    N, H, W, Cin = x_nhwc.shape
    Cout = w_oihw.shape[0]
    CoutP = _round_up(Cout, LANE)
    Ho = (H + 2 - 3) // stride + 1
    Wo = (W + 2 - 3) // stride + 1
    M = N * Ho * Wo
    tm = _row_tile(M)
    M_pad = _round_up(M, tm)

    if 9 * Cin <= LANE:
        # Folded-tap path (small Cin): one dense-K matmul, K = 9*Cin -> 128.
        patches = _extract_patches(x_nhwc, 3, stride, 1)       # (N,Ho,Wo,9*Cin)
        p = patches.reshape(M, 9 * Cin)
        p = jnp.pad(p, ((0, M_pad - M), (0, LANE - 9 * Cin))).astype(jnp.bfloat16)
        wt = jnp.transpose(w_oihw, (2, 3, 1, 0)).reshape(9 * Cin, Cout)
        wt = jnp.pad(wt, ((0, LANE - 9 * Cin),
                          (0, CoutP - Cout))).astype(jnp.bfloat16)
        y, s_p, q_p = matmul_stats(p, wt, tm)
    else:
        # Polyphase 9-tap fallback for real ResNet channel counts (>= 15 in),
        # avoiding the 9x im2col HBM blowup.
        y, s_p, q_p = conv3x3_phases(x_nhwc, w_oihw, stride, Ho, Wo)
        y = jnp.pad(y, ((0, M_pad - M), (0, 0)))

    ssum = jnp.sum(s_p, axis=0)[0]        # reduce tiny per-tile partials in JAX
    ssq = jnp.sum(q_p, axis=0)[0]
    return y, ssum, ssq, (Ho, Wo, M, M_pad, tm)


def bn_scale_shift(ssum, ssq, count, gamma_pad, beta_pad, eps=1e-5):
    """Training-mode BN (batch stats, biased var) folded into scale/shift.
    E[y^2]-E[y]^2 in f32 can cancel catastrophically at very large counts; the
    clamp guards it (a centered two-pass over the stored y would be more robust)."""
    mean = ssum / count
    var = jnp.maximum(ssq / count - mean * mean, 0.0)
    scale = gamma_pad * jax.lax.rsqrt(var + eps)
    shift = beta_pad - mean * scale
    return scale[None, :], shift[None, :]


def init_residual_params(key, input_channels, num_channels, use_1x1conv):
    ks = jax.random.split(key, 6)
    p = {
        "w1": 0.1 * jax.random.normal(ks[0], (num_channels, input_channels, 3, 3), jnp.float32),
        # b1/b2 exist in the PyTorch module but are provably no-ops: training-
        # mode BatchNorm subtracts the batch mean, cancelling any conv bias.
        "b1": 0.1 * jax.random.normal(ks[1], (num_channels,), jnp.float32),
        "w2": 0.1 * jax.random.normal(ks[2], (num_channels, num_channels, 3, 3), jnp.float32),
        "b2": 0.1 * jax.random.normal(ks[3], (num_channels,), jnp.float32),
        # BatchNorm2d default init: weight = 1, bias = 0
        "g1": jnp.ones((num_channels,), jnp.float32),
        "be1": jnp.zeros((num_channels,), jnp.float32),
        "g2": jnp.ones((num_channels,), jnp.float32),
        "be2": jnp.zeros((num_channels,), jnp.float32),
    }
    if use_1x1conv:
        p["w3"] = 0.1 * jax.random.normal(ks[4], (num_channels, input_channels, 1, 1), jnp.float32)
        p["b3"] = 0.1 * jax.random.normal(ks[5], (num_channels,), jnp.float32)
    return p


@functools.partial(jax.jit, static_argnames=("stride", "use_1x1conv"))
def residual_forward(x_nchw, params, stride=1, use_1x1conv=False):
    """Y = relu(bn2(conv2(relu(bn1(conv1(X))))) + [conv3](X))  (training-mode BN)."""
    x = jnp.transpose(x_nchw, (0, 2, 3, 1)).astype(jnp.float32)   # NCHW -> NHWC
    N, H, W, Cin = x.shape
    Cout = params["w1"].shape[0]
    CoutP = _round_up(Cout, LANE)

    # ---- conv1 (3x3, pad 1, stride s, bias cancelled by BN1) + fused BN1 stats
    y1, s1, q1, (Ho, Wo, M, M_pad, tm) = conv3x3(x, params["w1"], stride)
    scale1, shift1 = bn_scale_shift(s1, q1, M,
                                    _pad_last(params["g1"], CoutP),
                                    _pad_last(params["be1"], CoutP))

    # ---- BN1 affine + ReLU (bf16 output feeds conv2's MXU directly)
    a1 = bn_relu(y1, scale1, shift1, tm)

    # ---- conv2 (3x3, pad 1, stride 1, bias cancelled by BN2) + fused BN2 stats
    # TODO(synk): the a1 -> conv2-patch gather below is an XLA-side HBM pass;
    # folding BN1+ReLU+patch extraction into the conv2 kernel (with an explicit
    # spatial-border mask) would remove it but is not worth it at these sizes.
    a1_img = a1[:M, :Cout].reshape(N, Ho, Wo, Cout)
    y2, s2, q2, _geom2 = conv3x3(a1_img, params["w2"], 1)
    scale2, shift2 = bn_scale_shift(s2, q2, M,
                                    _pad_last(params["g2"], CoutP),
                                    _pad_last(params["be2"], CoutP))

    # ---- fused epilogue: [1x1 skip conv] + BN2 affine + residual add + ReLU
    if use_1x1conv:
        CinP = _round_up(Cin, LANE)
        xs = x[:, ::stride, ::stride, :][:, :Ho, :Wo, :].reshape(M, Cin)
        xs = jnp.pad(xs, ((0, M_pad - M), (0, CinP - Cin))).astype(jnp.bfloat16)
        w3 = jnp.transpose(params["w3"], (2, 3, 1, 0)).reshape(Cin, Cout)
        w3 = jnp.pad(w3, ((0, CinP - Cin), (0, CoutP - Cout))).astype(jnp.bfloat16)
        b3 = _pad_last(params["b3"], CoutP)[None, :]
        out = skip_conv_bn_add_relu(y2, xs, w3, b3, scale2, shift2, tm)
    else:
        assert stride == 1 and Cin == Cout, \
            "identity skip requires stride == 1 and input_channels == num_channels"
        res = jnp.pad(x.reshape(N * H * W, Cin),
                      ((0, M_pad - M), (0, CoutP - Cin)))        # f32 residual
        out = bn_add_relu(y2, res, scale2, shift2, tm)

    # Final slice + NHWC->NCHW transpose kept for module fidelity; skip it if
    # the consumer accepts NHWC with lane-padded channels (saves one HBM pass).
    out = out[:M].reshape(N, Ho, Wo, CoutP)[..., :Cout]
    return jnp.transpose(out, (0, 3, 1, 2))

    # TODO(synk): BatchNorm2d running_mean/running_var momentum updates are
    # stateful training-time side effects that do not affect the forward output;
    # they are not modeled.


# ----------------------------- pure-JAX reference ----------------------------

def reference_forward(x_nchw, p, stride, use_1x1conv, eps=1e-5):
    """f32 reference of the PyTorch module (training-mode BatchNorm)."""
    def conv(x, w, b, s, pad):
        y = jax.lax.conv_general_dilated(
            x, w, (s, s), [(pad, pad), (pad, pad)],
            dimension_numbers=("NCHW", "OIHW", "NCHW"))
        return y + b[None, :, None, None]

    def bn(y, g, b):
        mean = jnp.mean(y, axis=(0, 2, 3), keepdims=True)
        var = jnp.var(y, axis=(0, 2, 3), keepdims=True)
        return ((y - mean) * jax.lax.rsqrt(var + eps) * g[None, :, None, None]
                + b[None, :, None, None])

    y = jax.nn.relu(bn(conv(x_nchw, p["w1"], p["b1"], stride, 1), p["g1"], p["be1"]))
    y = bn(conv(y, p["w2"], p["b2"], 1, 1), p["g2"], p["be2"])
    sk = conv(x_nchw, p["w3"], p["b3"], stride, 0) if use_1x1conv else x_nchw
    return jax.nn.relu(y + sk)


# ---------------------------------- main -------------------------------------

if __name__ == "__main__":
    key = jax.random.PRNGKey(0)
    kx, kp = jax.random.split(key)

    batch, in_ch, out_ch, hw = 2, 4, 8, 16
    x = jax.random.normal(kx, (batch, in_ch, hw, hw), jnp.float32)   # NCHW

    # Config 1: downsampling block (stride 2, 1x1-conv projection skip).
    params = init_residual_params(kp, in_ch, out_ch, use_1x1conv=True)
    y = jax.block_until_ready(
        residual_forward(x, params, stride=2, use_1x1conv=True))
    assert y.shape == (batch, out_ch, hw // 2, hw // 2), y.shape
    assert bool(jnp.all(jnp.isfinite(y))) and bool(jnp.all(y >= 0.0))
    err1 = float(jnp.max(jnp.abs(y - reference_forward(x, params, 2, True))))
    assert err1 < 0.2, f"config1 mismatch vs f32 reference: {err1}"  # bf16 MXU tol

    # Config 2: identity block (stride 1, no projection, Cin == Cout).
    params2 = init_residual_params(kp, in_ch, in_ch, use_1x1conv=False)
    y2 = jax.block_until_ready(
        residual_forward(x, params2, stride=1, use_1x1conv=False))
    assert y2.shape == (batch, in_ch, hw, hw), y2.shape
    assert bool(jnp.all(jnp.isfinite(y2))) and bool(jnp.all(y2 >= 0.0))
    err2 = float(jnp.max(jnp.abs(y2 - reference_forward(x, params2, 1, False))))
    assert err2 < 0.2, f"config2 mismatch vs f32 reference: {err2}"

    print("KERNEL_OK")
</pallas_src>

<mosaic_0001>
module attributes {stable_mosaic.version = 11 : i64} {
  func.func @_bn_relu_kernel(%arg0: i32, %arg1: memref<256x128xbf16, #tpu.memory_space<vmem>>, %arg2: memref<1x128xf32, #tpu.memory_space<vmem>>, %arg3: memref<1x128xf32, #tpu.memory_space<vmem>>, %arg4: memref<256x128xbf16, #tpu.memory_space<vmem>>) attributes {dimension_semantics = [#tpu.dimension_semantics<parallel>], iteration_bounds = array<i64: 1>, scalar_prefetch = 0 : i64, scratch_operands = 0 : i64, tpu.core_type = #tpu.core_type<tc>, window_params = [{transform_indices = @transform_0, window_bounds = array<i64: 256, 128>}, {pipeline_mode = #tpu.pipeline_mode<synchronous>, transform_indices = @transform_1, window_bounds = array<i64: 1, 128>}, {pipeline_mode = #tpu.pipeline_mode<synchronous>, transform_indices = @transform_2, window_bounds = array<i64: 1, 128>}, {transform_indices = @transform_3, window_bounds = array<i64: 256, 128>}]} {
    %c0 = arith.constant 0 : index
    %c0_0 = arith.constant 0 : index
    %0 = vector.load %arg1[%c0, %c0_0] : memref<256x128xbf16, #tpu.memory_space<vmem>>, vector<256x128xbf16>
    %1 = arith.extf %0 : vector<256x128xbf16> to vector<256x128xf32>
    %c0_1 = arith.constant 0 : index
    %c0_2 = arith.constant 0 : index
    %2 = vector.load %arg2[%c0_1, %c0_2] : memref<1x128xf32, #tpu.memory_space<vmem>>, vector<1x128xf32>
    %3 = vector.broadcast %2 : vector<1x128xf32> to vector<256x128xf32>
    %4 = arith.mulf %1, %3 : vector<256x128xf32>
    %c0_3 = arith.constant 0 : index
    %c0_4 = arith.constant 0 : index
    %5 = vector.load %arg3[%c0_3, %c0_4] : memref<1x128xf32, #tpu.memory_space<vmem>>, vector<1x128xf32>
    %6 = vector.broadcast %5 : vector<1x128xf32> to vector<256x128xf32>
    %7 = arith.addf %4, %6 : vector<256x128xf32>
    %cst = arith.constant 0.000000e+00 : f32
    %8 = vector.broadcast %cst : f32 to vector<256x128xf32>
    %9 = arith.maximumf %7, %8 : vector<256x128xf32>
    %10 = arith.truncf %9 : vector<256x128xf32> to vector<256x128xbf16>
    %c0_5 = arith.constant 0 : index
    %c0_6 = arith.constant 0 : index
    %11 = vector.load %arg4[%c0_5, %c0_6] : memref<256x128xbf16, #tpu.memory_space<vmem>>, vector<256x128xbf16>
    tpu.vector_store %arg4[%c0_5, %c0_6], %10 {strides = array<i32>} : memref<256x128xbf16, #tpu.memory_space<vmem>>, vector<256x128xbf16>,
    return
  }
  func.func @transform_0(%arg0: i32) -> (i32, i32) {
    %c0_i32 = arith.constant 0 : i32
    %c0_i32_0 = arith.constant 0 : i32
    return %arg0, %c0_i32 : i32, i32
  }
  func.func @transform_1(%arg0: i32) -> (i32, i32) {
    %c0_i32 = arith.constant 0 : i32
    %c0_i32_0 = arith.constant 0 : i32
    %c0_i32_1 = arith.constant 0 : i32
    return %c0_i32, %c0_i32_0 : i32, i32
  }
  func.func @transform_2(%arg0: i32) -> (i32, i32) {
    %c0_i32 = arith.constant 0 : i32
    %c0_i32_0 = arith.constant 0 : i32
    %c0_i32_1 = arith.constant 0 : i32
    return %c0_i32, %c0_i32_0 : i32, i32
  }
  func.func @transform_3(%arg0: i32) -> (i32, i32) {
    %c0_i32 = arith.constant 0 : i32
    %c0_i32_0 = arith.constant 0 : i32
    return %arg0, %c0_i32 : i32, i32
  }
}

module attributes {stable_mosaic.version = 11 : i64} {
  func.func @_matmul_stats_kernel(%arg0: i32, %arg1: memref<256x128xbf16, #tpu.memory_space<vmem>>, %arg2: memref<128x128xbf16, #tpu.memory_space<vmem>>, %arg3: memref<256x128xbf16, #tpu.memory_space<vmem>>, %arg4: memref<1x1x128xf32, #tpu.memory_space<vmem>>, %arg5: memref<1x1x128xf32, #tpu.memory_space<vmem>>) attributes {dimension_semantics = [#tpu.dimension_semantics<parallel>], iteration_bounds = array<i64: 1>, scalar_prefetch = 0 : i64, scratch_operands = 0 : i64, tpu.core_type = #tpu.core_type<tc>, window_params = [{transform_indices = @transform_0, window_bounds = array<i64: 256, 128>}, {pipeline_mode = #tpu.pipeline_mode<synchronous>, transform_indices = @transform_1, window_bounds = array<i64: 128, 128>}, {transform_indices = @transform_2, window_bounds = array<i64: 256, 128>}, {transform_indices = @transform_3, window_bounds = array<i64: 1, 1, 128>}, {transform_indices = @transform_4, window_bounds = array<i64: 1, 1, 128>}]} {
    %c0 = arith.constant 0 : index
    %c0_0 = arith.constant 0 : index
    %0 = vector.load %arg1[%c0, %c0_0] : memref<256x128xbf16, #tpu.memory_space<vmem>>, vector<256x128xbf16>
    %c0_1 = arith.constant 0 : index
    %c0_2 = arith.constant 0 : index
    %1 = vector.load %arg2[%c0_1, %c0_2] : memref<128x128xbf16, #tpu.memory_space<vmem>>, vector<128x128xbf16>
    %cst = arith.constant dense<0.000000e+00> : vector<256x128xf32>
    %2 = tpu.matmul %0, %1, %cst {dimension_numbers = #tpu.dot_dimension_numbers<[1], [0], [0], [1], [0, 0, 1, 1], [], []>} : vector<256x128xbf16>, vector<128x128xbf16>, vector<256x128xf32> -> vector<256x128xf32>
    %3 = arith.truncf %2 : vector<256x128xf32> to vector<256x128xbf16>
    %c0_3 = arith.constant 0 : index
    %c0_4 = arith.constant 0 : index
    %4 = vector.load %arg3[%c0_3, %c0_4] : memref<256x128xbf16, #tpu.memory_space<vmem>>, vector<256x128xbf16>
    tpu.vector_store %arg3[%c0_3, %c0_4], %3 {strides = array<i32>} : memref<256x128xbf16, #tpu.memory_space<vmem>>, vector<256x128xbf16>,
    %cst_5 = arith.constant dense<0.000000e+00> : vector<128xf32>
    %5 = vector.multi_reduction <add>, %2, %cst_5 [0] : vector<256x128xf32> to vector<128xf32>
    %6 = vector.shape_cast %5 : vector<128xf32> to vector<1x128xf32>
    %7 = vector.shape_cast %6 : vector<1x128xf32> to vector<1x1x128xf32>
    %c0_6 = arith.constant 0 : index
    %c0_7 = arith.constant 0 : index
    %c0_8 = arith.constant 0 : index
    %8 = vector.load %arg4[%c0_6, %c0_7, %c0_8] : memref<1x1x128xf32, #tpu.memory_space<vmem>>, vector<1x1x128xf32>
    tpu.vector_store %arg4[%c0_6, %c0_7, %c0_8], %7 {strides = array<i32>} : memref<1x1x128xf32, #tpu.memory_space<vmem>>, vector<1x1x128xf32>,
    %9 = arith.mulf %2, %2 : vector<256x128xf32>
    %cst_9 = arith.constant dense<0.000000e+00> : vector<128xf32>
    %10 = vector.multi_reduction <add>, %9, %cst_9 [0] : vector<256x128xf32> to vector<128xf32>
    %11 = vector.shape_cast %10 : vector<128xf32> to vector<1x128xf32>
    %12 = vector.shape_cast %11 : vector<1x128xf32> to vector<1x1x128xf32>
    %c0_10 = arith.constant 0 : index
    %c0_11 = arith.constant 0 : index
    %c0_12 = arith.constant 0 : index
    %13 = vector.load %arg5[%c0_10, %c0_11, %c0_12] : memref<1x1x128xf32, #tpu.memory_space<vmem>>, vector<1x1x128xf32>
    tpu.vector_store %arg5[%c0_10, %c0_11, %c0_12], %12 {strides = array<i32>} : memref<1x1x128xf32, #tpu.memory_space<vmem>>, vector<1x1x128xf32>,
    return
  }
  func.func @transform_0(%arg0: i32) -> (i32, i32) {
    %c0_i32 = arith.constant 0 : i32
    %c0_i32_0 = arith.constant 0 : i32
    return %arg0, %c0_i32 : i32, i32
  }
  func.func @transform_1(%arg0: i32) -> (i32, i32) {
    %c0_i32 = arith.constant 0 : i32
    %c0_i32_0 = arith.constant 0 : i32
    %c0_i32_1 = arith.constant 0 : i32
    return %c0_i32, %c0_i32_0 : i32, i32
  }
  func.func @transform_2(%arg0: i32) -> (i32, i32) {
    %c0_i32 = arith.constant 0 : i32
    %c0_i32_0 = arith.constant 0 : i32
    return %arg0, %c0_i32 : i32, i32
  }
  func.func @transform_3(%arg0: i32) -> (i32, i32, i32) {
    %c0_i32 = arith.constant 0 : i32
    %c0_i32_0 = arith.constant 0 : i32
    %c0_i32_1 = arith.constant 0 : i32
    return %arg0, %c0_i32, %c0_i32_0 : i32, i32, i32
  }
  func.func @transform_4(%arg0: i32) -> (i32, i32, i32) {
    %c0_i32 = arith.constant 0 : i32
    %c0_i32_0 = arith.constant 0 : i32
    %c0_i32_1 = arith.constant 0 : i32
    return %arg0, %c0_i32, %c0_i32_0 : i32, i32, i32
  }
}

module attributes {stable_mosaic.version = 11 : i64} {
  func.func @_skip_conv_bn_add_relu_kernel(%arg0: i32, %arg1: memref<256x128xbf16, #tpu.memory_space<vmem>>, %arg2: memref<256x128xbf16, #tpu.memory_space<vmem>>, %arg3: memref<128x128xbf16, #tpu.memory_space<vmem>>, %arg4: memref<1x128xf32, #tpu.memory_space<vmem>>, %arg5: memref<1x128xf32, #tpu.memory_space<vmem>>, %arg6: memref<1x128xf32, #tpu.memory_space<vmem>>, %arg7: memref<256x128xf32, #tpu.memory_space<vmem>>) attributes {dimension_semantics = [#tpu.dimension_semantics<parallel>], iteration_bounds = array<i64: 1>, scalar_prefetch = 0 : i64, scratch_operands = 0 : i64, tpu.core_type = #tpu.core_type<tc>, window_params = [{transform_indices = @transform_0, window_bounds = array<i64: 256, 128>}, {transform_indices = @transform_1, window_bounds = array<i64: 256, 128>}, {pipeline_mode = #tpu.pipeline_mode<synchronous>, transform_indices = @transform_2, window_bounds = array<i64: 128, 128>}, {pipeline_mode = #tpu.pipeline_mode<synchronous>, transform_indices = @transform_3, window_bounds = array<i64: 1, 128>}, {pipeline_mode = #tpu.pipeline_mode<synchronous>, transform_indices = @transform_4, window_bounds = array<i64: 1, 128>}, {pipeline_mode = #tpu.pipeline_mode<synchronous>, transform_indices = @transform_5, window_bounds = array<i64: 1, 128>}, {transform_indices = @transform_6, window_bounds = array<i64: 256, 128>}]} {
    %c0 = arith.constant 0 : index
    %c0_0 = arith.constant 0 : index
    %0 = vector.load %arg2[%c0, %c0_0] : memref<256x128xbf16, #tpu.memory_space<vmem>>, vector<256x128xbf16>
    %c0_1 = arith.constant 0 : index
    %c0_2 = arith.constant 0 : index
    %1 = vector.load %arg3[%c0_1, %c0_2] : memref<128x128xbf16, #tpu.memory_space<vmem>>, vector<128x128xbf16>
    %cst = arith.constant dense<0.000000e+00> : vector<256x128xf32>
    %2 = tpu.matmul %0, %1, %cst {dimension_numbers = #tpu.dot_dimension_numbers<[1], [0], [0], [1], [0, 0, 1, 1], [], []>} : vector<256x128xbf16>, vector<128x128xbf16>, vector<256x128xf32> -> vector<256x128xf32>
    %c0_3 = arith.constant 0 : index
    %c0_4 = arith.constant 0 : index
    %3 = vector.load %arg4[%c0_3, %c0_4] : memref<1x128xf32, #tpu.memory_space<vmem>>, vector<1x128xf32>
    %4 = vector.broadcast %3 : vector<1x128xf32> to vector<256x128xf32>
    %5 = arith.addf %2, %4 : vector<256x128xf32>
    %c0_5 = arith.constant 0 : index
    %c0_6 = arith.constant 0 : index
    %6 = vector.load %arg1[%c0_5, %c0_6] : memref<256x128xbf16, #tpu.memory_space<vmem>>, vector<256x128xbf16>
    %7 = arith.extf %6 : vector<256x128xbf16> to vector<256x128xf32>
    %c0_7 = arith.constant 0 : index
    %c0_8 = arith.constant 0 : index
    %8 = vector.load %arg5[%c0_7, %c0_8] : memref<1x128xf32, #tpu.memory_space<vmem>>, vector<1x128xf32>
    %9 = vector.broadcast %8 : vector<1x128xf32> to vector<256x128xf32>
    %10 = arith.mulf %7, %9 : vector<256x128xf32>
    %c0_9 = arith.constant 0 : index
    %c0_10 = arith.constant 0 : index
    %11 = vector.load %arg6[%c0_9, %c0_10] : memref<1x128xf32, #tpu.memory_space<vmem>>, vector<1x128xf32>
    %12 = vector.broadcast %11 : vector<1x128xf32> to vector<256x128xf32>
    %13 = arith.addf %10, %12 : vector<256x128xf32>
    %14 = arith.addf %13, %5 : vector<256x128xf32>
    %cst_11 = arith.constant 0.000000e+00 : f32
    %15 = vector.broadcast %cst_11 : f32 to vector<256x128xf32>
    %16 = arith.maximumf %14, %15 : vector<256x128xf32>
    %c0_12 = arith.constant 0 : index
    %c0_13 = arith.constant 0 : index
    %17 = vector.load %arg7[%c0_12, %c0_13] : memref<256x128xf32, #tpu.memory_space<vmem>>, vector<256x128xf32>
    tpu.vector_store %arg7[%c0_12, %c0_13], %16 {strides = array<i32>} : memref<256x128xf32, #tpu.memory_space<vmem>>, vector<256x128xf32>,
    return
  }
  func.func @transform_0(%arg0: i32) -> (i32, i32) {
    %c0_i32 = arith.constant 0 : i32
    %c0_i32_0 = arith.constant 0 : i32
    return %arg0, %c0_i32 : i32, i32
  }
  func.func @transform_1(%arg0: i32) -> (i32, i32) {
    %c0_i32 = arith.constant 0 : i32
    %c0_i32_0 = arith.constant 0 : i32
    return %arg0, %c0_i32 : i32, i32
  }
  func.func @transform_2(%arg0: i32) -> (i32, i32) {
    %c0_i32 = arith.constant 0 : i32
    %c0_i32_0 = arith.constant 0 : i32
    %c0_i32_1 = arith.constant 0 : i32
    return %c0_i32, %c0_i32_0 : i32, i32
  }
  func.func @transform_3(%arg0: i32) -> (i32, i32) {
    %c0_i32 = arith.constant 0 : i32
    %c0_i32_0 = arith.constant 0 : i32
    %c0_i32_1 = arith.constant 0 : i32
    return %c0_i32, %c0_i32_0 : i32, i32
  }
  func.func @transform_4(%arg0: i32) -> (i32, i32) {
    %c0_i32 = arith.constant 0 : i32
    %c0_i32_0 = arith.constant 0 : i32
    %c0_i32_1 = arith.constant 0 : i32
    return %c0_i32, %c0_i32_0 : i32, i32
  }
  func.func @transform_5(%arg0: i32) -> (i32, i32) {
    %c0_i32 = arith.constant 0 : i32
    %c0_i32_0 = arith.constant 0 : i32
    %c0_i32_1 = arith.constant 0 : i32
    return %c0_i32, %c0_i32_0 : i32, i32
  }
  func.func @transform_6(%arg0: i32) -> (i32, i32) {
    %c0_i32 = arith.constant 0 : i32
    %c0_i32_0 = arith.constant 0 : i32
    return %arg0, %c0_i32 : i32, i32
  }
}

</mosaic_0001>

<bundles_post_ra>
// kernel: residual_forward.5
= control target key start
LH: loop header
LB: loop body
LE: loop exit
PB: predicated region body
PF: predicated region fallthrough
CT: control target
= control target key end

     0   :  { %s616_s0 = inlined_call_operand.vmem [shape: bf16[256,128], index: 0, kind: input, shape index: {}]   ;;  %s617_s1 = inlined_call_operand.vmem [shape: f32[1,128], index: 1, kind: input, shape index: {}]   ;;  %s618_s2 = inlined_call_operand.vmem [shape: f32[1,128], index: 2, kind: input, shape index: {}]   ;;  %s619_s3 = inlined_call_operand.vmem [shape: bf16[256,128], index: 3, kind: output, shape index: {}]  }
   0x1   :  { %v251_v0 = vld [vmem:[%s616_s0] sm:$0xff]   ;;  %v394_v5 = vld [vmem:[%s616_s0 + $0x8] sm:$0xff]   ;;  %v395_v8 = vld [vmem:[%s616_s0 + $0x10] sm:$0xff]  }
   0x2   :  { %v452_v1 = vld [vmem:[%s617_s1] ss:$0 sm:$0xff]  ;;  %v252_v2 = vunpack.c.l.bf16 %v251_v0  ;;  %v253_v3 = vunpack.c.h.bf16 %v251_v0  ;;  %v256_v6 = vunpack.c.l.bf16 %v394_v5  ;;  %v257_v7 = vunpack.c.h.bf16 %v394_v5  ;;  %v396_v9 = vld [vmem:[%s616_s0 + $0x18] sm:$0xff]   ;;  %v398_v35 = vld [vmem:[%s616_s0 + $0x28] sm:$0xff]  }
   0x3   :  { %v457_v4 = vld [vmem:[%s618_s2] ss:$0 sm:$0xff]  ;;  %v260_v12 = vunpack.c.l.bf16 %v395_v8  ;;  %v261_v13 = vunpack.c.h.bf16 %v395_v8  ;;  %v264_v16 = vunpack.c.l.bf16 %v396_v9  ;;  %v265_v17 = vunpack.c.h.bf16 %v396_v9  ;;  %v399_v40 = vld [vmem:[%s616_s0 + $0x30] sm:$0xff]   ;;  %v400_v45 = vld [vmem:[%s616_s0 + $0x38] sm:$0xff]  }
   0x4   :  { %v82_v10 = vmul.f32 %v452_v1, %v252_v2  ;;  %v83_v11 = vmul.f32 %v452_v1, %v253_v3  ;;  %v84_v14 = vmul.f32 %v452_v1, %v256_v6  ;;  %v85_v15 = vmul.f32 %v452_v1, %v257_v7  ;;  %v397_v26 = vld [vmem:[%s616_s0 + $0x20] sm:$0xff]  }
   0x5   :  { %v86_v20 = vmul.f32 %v452_v1, %v260_v12  ;;  %v87_v21 = vmul.f32 %v452_v1, %v261_v13  ;;  %v88_v24 = vmul.f32 %v452_v1, %v264_v16  ;;  %v89_v25 = vmul.f32 %v452_v1, %v265_v17  ;;  %v401_v62 = vld [vmem:[%s616_s0 + $0x40] sm:$0xff]   ;;  %v402_v13 = vld [vmem:[%s616_s0 + $0x48] sm:$0xff]  }
   0x6   :  { %v118_v18 = vadd.f32 %v457_v4, %v82_v10  ;;  %v119_v19 = vadd.f32 %v457_v4, %v83_v11  ;;  %v120_v22 = vadd.f32 %v457_v4, %v84_v14  ;;  %v121_v23 = vadd.f32 %v457_v4, %v85_v15 }
   0x7   :  { %v122_v29 = vadd.f32 %v457_v4, %v86_v20  ;;  %v123_v30 = vadd.f32 %v457_v4, %v87_v21  ;;  %v124_v33 = vadd.f32 %v457_v4, %v88_v24  ;;  %v125_v34 = vadd.f32 %v457_v4, %v89_v25 }
   0x8   :  { %v150_v27 = vmax.f32 %v118_v18, 0.0  ;;  %v151_v28 = vmax.f32 %v119_v19, 0.0  ;;  %v152_v31 = vmax.f32 %v120_v22, 0.0  ;;  %v153_v32 = vmax.f32 %v121_v23, 0.0  ;;  %v403_v18 = vld [vmem:[%s616_s0 + $0x50] sm:$0xff]   ;;  %v404_v23 = vld [vmem:[%s616_s0 + $0x58] sm:$0xff]  }
   0x9   :  { %v154_v37 = vmax.f32 %v122_v29, 0.0  ;;  %v155_v38 = vmax.f32 %v123_v30, 0.0  ;;  %v268_v39 = vunpack.c.l.bf16 %v397_v26  ;;  %v156_v42 = vmax.f32 %v124_v33, 0.0 }
   0xa   :  { %v317_v36 = vpack.c.bf16 %v151_v28, %v150_v27  ;;  %v322_v41 = vpack.c.bf16 %v153_v32, %v152_v31  ;;  %v157_v43 = vmax.f32 %v125_v34, 0.0  ;;  %v269_v44 = vunpack.c.h.bf16 %v397_v26 }
   0xb   :  { %v327_v46 = vpack.c.bf16 %v155_v38, %v154_v37  ;;  %v90_v47 = vmul.f32 %v452_v1, %v268_v39  ;;  %v272_v48 = vunpack.c.l.bf16 %v398_v35  ;;  %v273_v49 = vunpack.c.h.bf16 %v398_v35 }
   0xc   :  { %318 = vst [vmem:[%s619_s3] sm:$0xff] %v317_v36   ;;  %v332_v50 = vpack.c.bf16 %v157_v43, %v156_v42  ;;  %v91_v51 = vmul.f32 %v452_v1, %v269_v44  ;;  %v276_v52 = vunpack.c.l.bf16 %v399_v40  ;;  %v277_v53 = vunpack.c.h.bf16 %v399_v40  ;;  %v405_v36 = vld [vmem:[%s616_s0 + $0x60] sm:$0xff]  }
   0xd   :  { %409 = vst [vmem:[%s619_s3 + $0x8] sm:$0xff] %v322_v41   ;;  %v126_v54 = vadd.f32 %v457_v4, %v90_v47  ;;  %v92_v55 = vmul.f32 %v452_v1, %v272_v48  ;;  %v93_v56 = vmul.f32 %v452_v1, %v273_v49  ;;  %v280_v57 = vunpack.c.l.bf16 %v400_v45 }
   0xe   :  { %410 = vst [vmem:[%s619_s3 + $0x10] sm:$0xff] %v327_v46   ;;  %v127_v58 = vadd.f32 %v457_v4, %v91_v51  ;;  %v94_v59 = vmul.f32 %v452_v1, %v276_v52  ;;  %v95_v60 = vmul.f32 %v452_v1, %v277_v53  ;;  %v281_v61 = vunpack.c.h.bf16 %v400_v45  ;;  %v406_v53 = vld [vmem:[%s616_s0 + $0x68] sm:$0xff]  }
   0xf   :  { %411 = vst [vmem:[%s619_s3 + $0x18] sm:$0xff] %v332_v50   ;;  %v158_v63 = vmax.f32 %v126_v54, 0.0  ;;  %v128_v0 = vadd.f32 %v457_v4, %v92_v55  ;;  %v129_v2 = vadd.f32 %v457_v4, %v93_v56  ;;  %v96_v3 = vmul.f32 %v452_v1, %v280_v57 }
  0x10   :  { %v159_v5 = vmax.f32 %v127_v58, 0.0  ;;  %v130_v6 = vadd.f32 %v457_v4, %v94_v59  ;;  %v131_v7 = vadd.f32 %v457_v4, %v95_v60  ;;  %v97_v8 = vmul.f32 %v452_v1, %v281_v61  ;;  %v407_v58 = vld [vmem:[%s616_s0 + $0x70] sm:$0xff]  }
  0x11   :  { %v160_v9 = vmax.f32 %v128_v0, 0.0  ;;  %v161_v10 = vmax.f32 %v129_v2, 0.0  ;;  %v132_v11 = vadd.f32 %v457_v4, %v96_v3  ;;  %v284_v12 = vunpack.c.l.bf16 %v401_v62 }
  0x12   :  { %v337_v14 = vpack.c.bf16 %v159_v5, %v158_v63  ;;  %v162_v15 = vmax.f32 %v130_v6, 0.0  ;;  %v163_v16 = vmax.f32 %v131_v7, 0.0  ;;  %v133_v17 = vadd.f32 %v457_v4, %v97_v8  ;;  %v408_v63 = vld [vmem:[%s616_s0 + $0x78] sm:$0xff]  }
  0x13   :  { %v342_v19 = vpack.c.bf16 %v161_v10, %v160_v9  ;;  %v164_v20 = vmax.f32 %v132_v11, 0.0  ;;  %v285_v21 = vunpack.c.h.bf16 %v401_v62  ;;  %v98_v22 = vmul.f32 %v452_v1, %v284_v12 }
  0x14   :  { %412 = vst [vmem:[%s619_s3 + $0x20] sm:$0xff] %v337_v14   ;;  %v347_v24 = vpack.c.bf16 %v163_v16, %v162_v15  ;;  %v165_v25 = vmax.f32 %v133_v17, 0.0  ;;  %v288_v26 = vunpack.c.l.bf16 %v402_v13  ;;  %v289_v27 = vunpack.c.h.bf16 %v402_v13 }
  0x15   :  { %413 = vst [vmem:[%s619_s3 + $0x28] sm:$0xff] %v342_v19   ;;  %v99_v28 = vmul.f32 %v452_v1, %v285_v21  ;;  %v134_v29 = vadd.f32 %v457_v4, %v98_v22  ;;  %v292_v30 = vunpack.c.l.bf16 %v403_v18  ;;  %v293_v31 = vunpack.c.h.bf16 %v403_v18 }
  0x16   :  { %414 = vst [vmem:[%s619_s3 + $0x30] sm:$0xff] %v347_v24   ;;  %v352_v32 = vpack.c.bf16 %v165_v25, %v164_v20  ;;  %v100_v33 = vmul.f32 %v452_v1, %v288_v26  ;;  %v101_v34 = vmul.f32 %v452_v1, %v289_v27  ;;  %v296_v35 = vunpack.c.l.bf16 %v404_v23 }
  0x17   :  { %v135_v37 = vadd.f32 %v457_v4, %v99_v28  ;;  %v166_v38 = vmax.f32 %v134_v29, 0.0  ;;  %v102_v39 = vmul.f32 %v452_v1, %v292_v30  ;;  %v103_v40 = vmul.f32 %v452_v1, %v293_v31 }
  0x18   :  { %415 = vst [vmem:[%s619_s3 + $0x38] sm:$0xff] %v352_v32   ;;  %v136_v41 = vadd.f32 %v457_v4, %v100_v33  ;;  %v137_v42 = vadd.f32 %v457_v4, %v101_v34  ;;  %v297_v43 = vunpack.c.h.bf16 %v404_v23  ;;  %v104_v44 = vmul.f32 %v452_v1, %v296_v35 }
  0x19   :  { %v167_v45 = vmax.f32 %v135_v37, 0.0  ;;  %v138_v46 = vadd.f32 %v457_v4, %v102_v39  ;;  %v139_v47 = vadd.f32 %v457_v4, %v103_v40  ;;  %v300_v48 = vunpack.c.l.bf16 %v405_v36 }
  0x1a   :  { %v168_v49 = vmax.f32 %v136_v41, 0.0  ;;  %v169_v50 = vmax.f32 %v137_v42, 0.0  ;;  %v105_v51 = vmul.f32 %v452_v1, %v297_v43  ;;  %v140_v52 = vadd.f32 %v457_v4, %v104_v44 }
  0x1b   :  { %v357_v54 = vpack.c.bf16 %v167_v45, %v166_v38  ;;  %v170_v55 = vmax.f32 %v138_v46, 0.0  ;;  %v171_v56 = vmax.f32 %v139_v47, 0.0  ;;  %v301_v57 = vunpack.c.h.bf16 %v405_v36 }
  0x1c   :  { %v362_v59 = vpack.c.bf16 %v169_v50, %v168_v49  ;;  %v141_v60 = vadd.f32 %v457_v4, %v105_v51  ;;  %v172_v61 = vmax.f32 %v140_v52, 0.0  ;;  %v106_v62 = vmul.f32 %v452_v1, %v300_v48 }
  0x1d   :  { %416 = vst [vmem:[%s619_s3 + $0x40] sm:$0xff] %v357_v54   ;;  %v367_v0 = vpack.c.bf16 %v171_v56, %v170_v55  ;;  %v107_v2 = vmul.f32 %v452_v1, %v301_v57  ;;  %v304_v3 = vunpack.c.l.bf16 %v406_v53  ;;  %v305_v5 = vunpack.c.h.bf16 %v406_v53 }
  0x1e   :  { %417 = vst [vmem:[%s619_s3 + $0x48] sm:$0xff] %v362_v59   ;;  %v173_v6 = vmax.f32 %v141_v60, 0.0  ;;  %v142_v7 = vadd.f32 %v457_v4, %v106_v62  ;;  %v308_v8 = vunpack.c.l.bf16 %v407_v58  ;;  %v309_v9 = vunpack.c.h.bf16 %v407_v58 }
  0x1f   :  { %418 = vst [vmem:[%s619_s3 + $0x50] sm:$0xff] %v367_v0   ;;  %v143_v10 = vadd.f32 %v457_v4, %v107_v2  ;;  %v108_v11 = vmul.f32 %v452_v1, %v304_v3  ;;  %v109_v12 = vmul.f32 %v452_v1, %v305_v5  ;;  %v312_v13 = vunpack.c.l.bf16 %v408_v63 }
  0x20   :  { %v372_v14 = vpack.c.bf16 %v173_v6, %v172_v61  ;;  %v174_v15 = vmax.f32 %v142_v7, 0.0  ;;  %v110_v16 = vmul.f32 %v452_v1, %v308_v8  ;;  %v111_v17 = vmul.f32 %v452_v1, %v309_v9 }
  0x21   :  { %v175_v18 = vmax.f32 %v143_v10, 0.0  ;;  %v144_v19 = vadd.f32 %v457_v4, %v108_v11  ;;  %v145_v20 = vadd.f32 %v457_v4, %v109_v12  ;;  %v313_v21 = vunpack.c.h.bf16 %v408_v63 }
  0x22   :  { %419 = vst [vmem:[%s619_s3 + $0x58] sm:$0xff] %v372_v14   ;;  %v146_v22 = vadd.f32 %v457_v4, %v110_v16  ;;  %v147_v23 = vadd.f32 %v457_v4, %v111_v17  ;;  %v112_v24 = vmul.f32 %v452_v1, %v312_v13 }
  0x23   :  { %v377_v25 = vpack.c.bf16 %v175_v18, %v174_v15  ;;  %v176_v26 = vmax.f32 %v144_v19, 0.0  ;;  %v177_v27 = vmax.f32 %v145_v20, 0.0  ;;  %v113_v28 = vmul.f32 %v452_v1, %v313_v21 }
  0x24   :  { %v178_v29 = vmax.f32 %v146_v22, 0.0  ;;  %v179_v30 = vmax.f32 %v147_v23, 0.0  ;;  %v148_v31 = vadd.f32 %v457_v4, %v112_v24 }
  0x25   :  { %420 = vst [vmem:[%s619_s3 + $0x60] sm:$0xff] %v377_v25   ;;  %v382_v32 = vpack.c.bf16 %v177_v27, %v176_v26  ;;  %v149_v33 = vadd.f32 %v457_v4, %v113_v28 }
  0x26   :  { %v387_v34 = vpack.c.bf16 %v179_v30, %v178_v29  ;;  %v180_v35 = vmax.f32 %v148_v31, 0.0 }
  0x27   :  { %421 = vst [vmem:[%s619_s3 + $0x68] sm:$0xff] %v382_v32   ;;  %v181_v36 = vmax.f32 %v149_v33, 0.0 }
  0x28   :  { %422 = vst [vmem:[%s619_s3 + $0x70] sm:$0xff] %v387_v34  }
  0x29   :  { %v392_v1 = vpack.c.bf16 %v181_v36, %v180_v35 }
  0x2b   :  { %423 = vst [vmem:[%s619_s3 + $0x78] sm:$0xff] %v392_v1  }

// kernel: residual_forward.4
= control target key start
LH: loop header
LB: loop body
LE: loop exit
PB: predicated region body
PF: predicated region fallthrough
CT: control target
= control target key end

     0   :  { %s983_s1 = inlined_call_operand.vmem [shape: bf16[128,128], index: 1, kind: input, shape index: {}]   ;;  %s984_s0 = inlined_call_operand.vmem [shape: bf16[256,128], index: 0, kind: input, shape index: {}]   ;;  %s985_s2 = inlined_call_operand.vmem [shape: bf16[256,128], index: 2, kind: output, shape index: {0}]   ;;  %s986_s3 = inlined_call_operand.vmem [shape: f32[1,1,128], index: 3, kind: output, shape index: {1}]   ;;  %s987_s4 = inlined_call_operand.vmem [shape: f32[1,1,128], index: 4, kind: output, shape index: {2}]  }
   0x1   :  { %v598_v0 = vld [vmem:[%s983_s1 + $0x38] sm:$0xff]  ;;  %v597_v1 = vld [vmem:[%s983_s1 + $0x30] sm:$0xff]  ;;  %v596_v2 = vld [vmem:[%s983_s1 + $0x28] sm:$0xff] }
   0x2   :  { %206 = vmatpush.bf16.msra.mxu0 %v598_v0  ;;  %694 = vmatpush.bf16.msra.mxu1 %v598_v0  ;;  %v595_v3 = vld [vmem:[%s983_s1 + $0x20] sm:$0xff]  ;;  %v594_v4 = vld [vmem:[%s983_s1 + $0x18] sm:$0xff]  ;;  %v593_v5 = vld [vmem:[%s983_s1 + $0x10] sm:$0xff] }
   0x3   :  { %695 = vmatpush.bf16.msra.mxu2 %v598_v0  ;;  %696 = vmatpush.bf16.msra.mxu3 %v598_v0  ;;  %v592_v6 = vld [vmem:[%s983_s1 + $0x8] sm:$0xff]  ;;  %v591_v7 = vld [vmem:[%s983_s1] sm:$0xff]  ;;  %v577_v16 = vld [vmem:[%s984_s0 + $0x10] sm:$0xff] }
   0x4   :  { %v575_v8 = vld [vmem:[%s984_s0] sm:$0xff]  ;;  %v576_v12 = vld [vmem:[%s984_s0 + $0x8] sm:$0xff]  ;;  %v581_v17 = vld [vmem:[%s984_s0 + $0x30] sm:$0xff] }
   0x5   :  { %v579_v9 = vld [vmem:[%s984_s0 + $0x20] sm:$0xff]  ;;  %v580_v13 = vld [vmem:[%s984_s0 + $0x28] sm:$0xff]  ;;  %v585_v18 = vld [vmem:[%s984_s0 + $0x50] sm:$0xff] }
   0x6   :  { %207 = vmatpush.bf16.msra.mxu0 %v597_v1  ;;  %697 = vmatpush.bf16.msra.mxu1 %v597_v1  ;;  %v583_v10 = vld [vmem:[%s984_s0 + $0x40] sm:$0xff]  ;;  %v584_v14 = vld [vmem:[%s984_s0 + $0x48] sm:$0xff]  ;;  %v589_v19 = vld [vmem:[%s984_s0 + $0x70] sm:$0xff] }
   0x7   :  { %698 = vmatpush.bf16.msra.mxu2 %v597_v1  ;;  %699 = vmatpush.bf16.msra.mxu3 %v597_v1  ;;  %v587_v11 = vld [vmem:[%s984_s0 + $0x60] sm:$0xff]  ;;  %v588_v15 = vld [vmem:[%s984_s0 + $0x68] sm:$0xff]  ;;  %v578_v20 = vld [vmem:[%s984_s0 + $0x18] sm:$0xff] }
   0x8   :  { %v582_v21 = vld [vmem:[%s984_s0 + $0x38] sm:$0xff] }
   0x9   :  { %v586_v22 = vld [vmem:[%s984_s0 + $0x58] sm:$0xff] }
   0xa   :  { %208 = vmatpush.bf16.msra.mxu0 %v596_v2  ;;  %700 = vmatpush.bf16.msra.mxu1 %v596_v2  ;;  %v590_v23 = vld [vmem:[%s984_s0 + $0x78] sm:$0xff] }
   0xb   :  { %701 = vmatpush.bf16.msra.mxu2 %v596_v2  ;;  %702 = vmatpush.bf16.msra.mxu3 %v596_v2 }
   0xe   :  { %209 = vmatpush.bf16.msra.mxu0 %v595_v3  ;;  %703 = vmatpush.bf16.msra.mxu1 %v595_v3 }
   0xf   :  { %704 = vmatpush.bf16.msra.mxu2 %v595_v3  ;;  %705 = vmatpush.bf16.msra.mxu3 %v595_v3 }
  0x12   :  { %210 = vmatpush.bf16.msra.mxu0 %v594_v4  ;;  %706 = vmatpush.bf16.msra.mxu1 %v594_v4 }
  0x13   :  { %707 = vmatpush.bf16.msra.mxu2 %v594_v4  ;;  %708 = vmatpush.bf16.msra.mxu3 %v594_v4 }
  0x16   :  { %211 = vmatpush.bf16.msra.mxu0 %v593_v5  ;;  %709 = vmatpush.bf16.msra.mxu1 %v593_v5 }
  0x17   :  { %710 = vmatpush.bf16.msra.mxu2 %v593_v5  ;;  %711 = vmatpush.bf16.msra.mxu3 %v593_v5 }
  0x1a   :  { %212 = vmatpush.bf16.msra.mxu0 %v592_v6  ;;  %712 = vmatpush.bf16.msra.mxu1 %v592_v6 }
  0x1b   :  { %713 = vmatpush.bf16.msra.mxu2 %v592_v6  ;;  %714 = vmatpush.bf16.msra.mxu3 %v592_v6 }
  0x1e   :  { %213 = vmatpush.bf16.msra.mxu0 %v591_v7  ;;  %715 = vmatpush.bf16.msra.mxu1 %v591_v7 }
  0x1f   :  { %716 = vmatpush.bf16.msra.mxu2 %v591_v7  ;;  %717 = vmatpush.bf16.msra.mxu3 %v591_v7 }
  0x21   :  { %214 = vmatmul.bf16.vlgmr.msra.gmra.mxu0 %v575_v8  ;;  %234 = vmatmul.bf16.vlgmr.msra.gmra.mxu1 %v579_v9 }
  0x22   :  { %254 = vmatmul.bf16.vlgmr.msra.gmra.mxu2 %v583_v10  ;;  %274 = vmatmul.bf16.vlgmr.msra.gmra.mxu3 %v587_v11 }
  0x31   :  { %219 = vmatmul.bf16.gmra.mxu0 %v576_v12  ;;  %239 = vmatmul.bf16.gmra.mxu1 %v580_v13 }
  0x32   :  { %259 = vmatmul.bf16.gmra.mxu2 %v584_v14  ;;  %279 = vmatmul.bf16.gmra.mxu3 %v588_v15 }
  0x41   :  { %224 = vmatmul.bf16.gmra.mxu0 %v577_v16  ;;  %244 = vmatmul.bf16.gmra.mxu1 %v581_v17 }
  0x42   :  { %264 = vmatmul.bf16.gmra.mxu2 %v585_v18  ;;  %284 = vmatmul.bf16.gmra.mxu3 %v589_v19 }
  0x51   :  { %229 = vmatmul.bf16.gmra.mxu0 %v578_v20  ;;  %249 = vmatmul.bf16.gmra.mxu1 %v582_v21 }
  0x52   :  { %269 = vmatmul.bf16.gmra.mxu2 %v586_v22  ;;  %289 = vmatmul.bf16.gmra.mxu3 %v590_v23 }
  0x9e   :  { %v215_v24 = vpop.f32.mrf.mxu0  ;;  %v815_v25 = vpop.f32.mrf.mxu1 }
  0x9f   :  { %v397_v57 = vmul.f32 %v215_v24, %v215_v24 }
  0xa5   :  { %v817_v26 = vpop.f32.mrf.mxu2  ;;  %v823_v31 = vpop.f32.mrf.mxu3 }
  0xa6   :  { %v217_v27 = vpop.f32.mrf.mxu0  ;;  %v819_v28 = vpop.f32.mrf.mxu1 }
  0xa7   :  { %v602_v29 = vpack.c.bf16 %v217_v27, %v215_v24  ;;  %v622_v30 = vpack.c.bf16 %v819_v28, %v815_v25  ;;  %v398_v56 = vmul.f32 %v217_v27, %v217_v27  ;;  %v359_v59 = vadd.f32 %v217_v27, %v215_v24 }
  0xa8   :  { %v405_v27 = vmul.f32 %v815_v25, %v815_v25 }
  0xa9   :  { %603 = vst [vmem:[%s985_s2] sm:$0xff] %v602_v29   ;;  %v429_v60 = vadd.f32 %v398_v56, %v397_v57 }
  0xaa   :  { %682 = vst [vmem:[%s985_s2 + $0x20] sm:$0xff] %v622_v30  }
  0xad   :  { %v831_v32 = vpop.f32.mrf.mxu2  ;;  %v837_v36 = vpop.f32.mrf.mxu3 }
  0xae   :  { %v220_v33 = vpop.f32.mrf.mxu0  ;;  %v833_v34 = vpop.f32.mrf.mxu1  ;;  %v642_v35 = vpack.c.bf16 %v831_v32, %v817_v26  ;;  %v662_v37 = vpack.c.bf16 %v837_v36, %v823_v31 }
  0xaf   :  { %v399_v58 = vmul.f32 %v220_v33, %v220_v33  ;;  %v360_v62 = vadd.f32 %v359_v59, %v220_v33 }
  0xb0   :  { %686 = vst [vmem:[%s985_s2 + $0x40] sm:$0xff] %v642_v35  }
  0xb1   :  { %690 = vst [vmem:[%s985_s2 + $0x60] sm:$0xff] %v662_v37   ;;  %v430_v0 = vadd.f32 %v429_v60, %v399_v58 }
  0xb5   :  { %v847_v38 = vpop.f32.mrf.mxu2  ;;  %v853_v43 = vpop.f32.mrf.mxu3 }
  0xb6   :  { %v222_v39 = vpop.f32.mrf.mxu0  ;;  %v849_v40 = vpop.f32.mrf.mxu1 }
  0xb7   :  { %v607_v41 = vpack.c.bf16 %v222_v39, %v220_v33  ;;  %v627_v42 = vpack.c.bf16 %v849_v40, %v833_v34  ;;  %v400_v61 = vmul.f32 %v222_v39, %v222_v39  ;;  %v361_v5 = vadd.f32 %v360_v62, %v222_v39 }
  0xb8   :  { %v406_v33 = vmul.f32 %v819_v28, %v819_v28  ;;  %v407_v39 = vmul.f32 %v833_v34, %v833_v34 }
  0xb9   :  { %679 = vst [vmem:[%s985_s2 + $0x8] sm:$0xff] %v607_v41   ;;  %v431_v7 = vadd.f32 %v430_v0, %v400_v61 }
  0xba   :  { %683 = vst [vmem:[%s985_s2 + $0x28] sm:$0xff] %v627_v42  }
  0xbd   :  { %v861_v44 = vpop.f32.mrf.mxu2  ;;  %v867_v48 = vpop.f32.mrf.mxu3 }
  0xbe   :  { %v225_v45 = vpop.f32.mrf.mxu0  ;;  %v863_v46 = vpop.f32.mrf.mxu1  ;;  %v647_v47 = vpack.c.bf16 %v861_v44, %v847_v38  ;;  %v667_v49 = vpack.c.bf16 %v867_v48, %v853_v43 }
  0xbf   :  { %v401_v1 = vmul.f32 %v225_v45, %v225_v45  ;;  %v362_v10 = vadd.f32 %v361_v5, %v225_v45  ;;  %v414_v5 = vmul.f32 %v831_v32, %v831_v32 }
  0xc0   :  { %687 = vst [vmem:[%s985_s2 + $0x48] sm:$0xff] %v647_v47  }
  0xc1   :  { %691 = vst [vmem:[%s985_s2 + $0x68] sm:$0xff] %v667_v49   ;;  %v432_v11 = vadd.f32 %v431_v7, %v401_v1 }
  0xc5   :  { %v877_v50 = vpop.f32.mrf.mxu2  ;;  %v883_v55 = vpop.f32.mrf.mxu3 }
  0xc6   :  { %v227_v51 = vpop.f32.mrf.mxu0  ;;  %v879_v52 = vpop.f32.mrf.mxu1 }
  0xc7   :  { %v612_v53 = vpack.c.bf16 %v227_v51, %v225_v45  ;;  %v632_v54 = vpack.c.bf16 %v879_v52, %v863_v46  ;;  %v402_v8 = vmul.f32 %v227_v51, %v227_v51  ;;  %v363_v13 = vadd.f32 %v362_v10, %v227_v51 }
  0xc8   :  { %v416_v10 = vmul.f32 %v861_v44, %v861_v44 }
  0xc9   :  { %680 = vst [vmem:[%s985_s2 + $0x10] sm:$0xff] %v612_v53   ;;  %v433_v14 = vadd.f32 %v432_v11, %v402_v8 }
  0xca   :  { %684 = vst [vmem:[%s985_s2 + $0x30] sm:$0xff] %v632_v54   ;;  %v409_v54 = vmul.f32 %v863_v46, %v863_v46 }
  0xcd   :  { %v891_v63 = vpop.f32.mrf.mxu2  ;;  %v895_v6 = vpop.f32.mrf.mxu3 }
  0xce   :  { %v230_v2 = vpop.f32.mrf.mxu0  ;;  %v250_v3 = vpop.f32.mrf.mxu1  ;;  %v652_v4 = vpack.c.bf16 %v891_v63, %v877_v50  ;;  %v672_v9 = vpack.c.bf16 %v895_v6, %v883_v55 }
  0xcf   :  { %v403_v12 = vmul.f32 %v230_v2, %v230_v2  ;;  %v364_v15 = vadd.f32 %v363_v13, %v230_v2  ;;  %v411_v60 = vmul.f32 %v250_v3, %v250_v3 }
  0xd0   :  { %688 = vst [vmem:[%s985_s2 + $0x50] sm:$0xff] %v652_v4  }
  0xd1   :  { %692 = vst [vmem:[%s985_s2 + $0x70] sm:$0xff] %v672_v9   ;;  %v434_v17 = vadd.f32 %v433_v14, %v403_v12 }
  0xd5   :  { %v270_v16 = vpop.f32.mrf.mxu2  ;;  %v905_v24 = vpop.f32.mrf.mxu3 }
  0xd6   :  { %v232_v18 = vpop.f32.mrf.mxu0  ;;  %v252_v19 = vpop.f32.mrf.mxu1 }
  0xd7   :  { %v617_v20 = vpack.c.bf16 %v232_v18, %v230_v2  ;;  %v365_v21 = vadd.f32 %v364_v15, %v232_v18  ;;  %v404_v22 = vmul.f32 %v232_v18, %v232_v18  ;;  %v637_v23 = vpack.c.bf16 %v252_v19, %v250_v3 }
  0xd8   :  { %v412_v1 = vmul.f32 %v252_v19, %v252_v19  ;;  %v418_v15 = vmul.f32 %v891_v63, %v891_v63 }
  0xd9   :  { %681 = vst [vmem:[%s985_s2 + $0x18] sm:$0xff] %v617_v20   ;;  %v366_v29 = vadd.f32 %v365_v21, %v815_v25  ;;  %v435_v30 = vadd.f32 %v434_v17, %v404_v22  ;;  %v408_v25 = vmul.f32 %v849_v40, %v849_v40 }
  0xda   :  { %685 = vst [vmem:[%s985_s2 + $0x38] sm:$0xff] %v637_v23  }
  0xdb   :  { %v367_v35 = vadd.f32 %v366_v29, %v819_v28  ;;  %v436_v37 = vadd.f32 %v435_v30, %v405_v27 }
  0xdd   :  { %v368_v41 = vadd.f32 %v367_v35, %v833_v34  ;;  %v437_v42 = vadd.f32 %v436_v37, %v406_v33  ;;  %v272_v45 = vpop.f32.mrf.mxu2  ;;  %v292_v53 = vpop.f32.mrf.mxu3  ;;  %v424_v35 = vmul.f32 %v867_v48, %v867_v48 }
  0xde   :  { %v657_v47 = vpack.c.bf16 %v272_v45, %v270_v16  ;;  %v677_v28 = vpack.c.bf16 %v292_v53, %v905_v24  ;;  %v420_v22 = vmul.f32 %v272_v45, %v272_v45 }
  0xdf   :  { %v438_v49 = vadd.f32 %v437_v42, %v407_v39  ;;  %v369_v51 = vadd.f32 %v368_v41, %v849_v40  ;;  %v410_v40 = vmul.f32 %v879_v52, %v879_v52 }
  0xe0   :  { %689 = vst [vmem:[%s985_s2 + $0x58] sm:$0xff] %v657_v47  }
  0xe1   :  { %v370_v34 = vadd.f32 %v369_v51, %v863_v46  ;;  %v439_v56 = vadd.f32 %v438_v49, %v408_v25  ;;  %693 = vst [vmem:[%s985_s2 + $0x78] sm:$0xff] %v677_v28   ;;  %v413_v46 = vmul.f32 %v817_v26, %v817_v26  ;;  %v427_v49 = vmul.f32 %v905_v24, %v905_v24 }
  0xe2   :  { %v428_v28 = vmul.f32 %v292_v53, %v292_v53 }
  0xe3   :  { %v371_v57 = vadd.f32 %v370_v34, %v879_v52  ;;  %v440_v58 = vadd.f32 %v439_v56, %v409_v54  ;;  %v415_v52 = vmul.f32 %v847_v38, %v847_v38 }
  0xe5   :  { %v372_v59 = vadd.f32 %v371_v57, %v250_v3  ;;  %v441_v61 = vadd.f32 %v440_v58, %v410_v40 }
  0xe7   :  { %v442_v62 = vadd.f32 %v441_v61, %v411_v60  ;;  %v373_v0 = vadd.f32 %v372_v59, %v252_v19  ;;  %v419_v19 = vmul.f32 %v270_v16, %v270_v16 }
  0xe9   :  { %v374_v2 = vadd.f32 %v373_v0, %v817_v26  ;;  %v443_v4 = vadd.f32 %v442_v62, %v412_v1  ;;  %v417_v26 = vmul.f32 %v877_v50, %v877_v50 }
  0xeb   :  { %v375_v7 = vadd.f32 %v374_v2, %v831_v32  ;;  %v444_v8 = vadd.f32 %v443_v4, %v413_v46 }
  0xed   :  { %v376_v3 = vadd.f32 %v375_v7, %v847_v38  ;;  %v445_v9 = vadd.f32 %v444_v8, %v414_v5 }
  0xef   :  { %v446_v11 = vadd.f32 %v445_v9, %v415_v52  ;;  %v377_v12 = vadd.f32 %v376_v3, %v861_v44  ;;  %v421_v44 = vmul.f32 %v823_v31, %v823_v31 }
  0xf1   :  { %v378_v13 = vadd.f32 %v377_v12, %v877_v50  ;;  %v447_v14 = vadd.f32 %v446_v11, %v416_v10  ;;  %v422_v50 = vmul.f32 %v837_v36, %v837_v36 }
  0xf3   :  { %v379_v32 = vadd.f32 %v378_v13, %v891_v63  ;;  %v448_v17 = vadd.f32 %v447_v14, %v417_v26  ;;  %v423_v63 = vmul.f32 %v853_v43, %v853_v43 }
  0xf5   :  { %v449_v38 = vadd.f32 %v448_v17, %v418_v15  ;;  %v380_v18 = vadd.f32 %v379_v32, %v270_v16 }
  0xf7   :  { %v450_v20 = vadd.f32 %v449_v38, %v419_v19  ;;  %v381_v21 = vadd.f32 %v380_v18, %v272_v45  ;;  %v426_v45 = vmul.f32 %v895_v6, %v895_v6 }
  0xf9   :  { %v382_v23 = vadd.f32 %v381_v21, %v823_v31  ;;  %v451_v27 = vadd.f32 %v450_v20, %v420_v22  ;;  %v425_v31 = vmul.f32 %v883_v55, %v883_v55 }
  0xfb   :  { %v383_v29 = vadd.f32 %v382_v23, %v837_v36  ;;  %v452_v30 = vadd.f32 %v451_v27, %v421_v44 }
  0xfd   :  { %v384_v16 = vadd.f32 %v383_v29, %v853_v43  ;;  %v453_v33 = vadd.f32 %v452_v30, %v422_v50 }
  0xff   :  { %v454_v37 = vadd.f32 %v453_v33, %v423_v63  ;;  %v385_v39 = vadd.f32 %v384_v16, %v867_v48 }
 0x101   :  { %v386_v41 = vadd.f32 %v385_v39, %v883_v55  ;;  %v455_v42 = vadd.f32 %v454_v37, %v424_v35 }
 0x103   :  { %v387_v36 = vadd.f32 %v386_v41, %v895_v6  ;;  %v456_v47 = vadd.f32 %v455_v42, %v425_v31 }
 0x105   :  { %v457_v43 = vadd.f32 %v456_v47, %v426_v45  ;;  %v388_v25 = vadd.f32 %v387_v36, %v905_v24 }
 0x107   :  { %v458_v51 = vadd.f32 %v457_v43, %v427_v49  ;;  %v389_v48 = vadd.f32 %v388_v25, %v292_v53 }
 0x109   :  { %v390_v54 = vrot.slane %v389_v48, 4  ;;  %v459_v34 = vadd.f32 %v458_v51, %v428_v28 }
 0x10b   :  { %v391_v56 = vadd.f32 %v390_v54, %v389_v48  ;;  %v460_v55 = vrot.slane %v459_v34, 4 }
 0x10d   :  { %v392_v40 = vrot.slane %v391_v56, 2  ;;  %v461_v57 = vadd.f32 %v460_v55, %v459_v34 }
 0x10f   :  { %v393_v58 = vadd.f32 %v392_v40, %v391_v56  ;;  %v462_v59 = vrot.slane %v461_v57, 2 }
 0x111   :  { %v394_v60 = vrot.slane %v393_v58, 1  ;;  %v463_v6 = vadd.f32 %v462_v59, %v461_v57 }
 0x113   :  { %v395_v61 = vadd.f32 %v394_v60, %v393_v58  ;;  %v464_v62 = vrot.slane %v463_v6, 1 }
 0x115   :  { %396 = vst [vmem:[%s986_s3] sm:$0x1] %v395_v61  ;;  %v465_v24 = vadd.f32 %v464_v62, %v463_v6 }
 0x117   :  { %466 = vst [vmem:[%s987_s4] sm:$0x1] %v465_v24 }

// kernel: residual_forward.7
= control target key start
LH: loop header
LB: loop body
LE: loop exit
PB: predicated region body
PF: predicated region fallthrough
CT: control target
= control target key end

     0   :  { %s1186_s2 = inlined_call_operand.vmem [shape: bf16[128,128], index: 2, kind: input, shape index: {}]   ;;  %s1187_s3 = inlined_call_operand.vmem [shape: f32[1,128], index: 3, kind: input, shape index: {}]   ;;  %s1188_s4 = inlined_call_operand.vmem [shape: f32[1,128], index: 4, kind: input, shape index: {}]   ;;  %s1189_s5 = inlined_call_operand.vmem [shape: f32[1,128], index: 5, kind: input, shape index: {}]   ;;  %s1190_s1 = inlined_call_operand.vmem [shape: bf16[256,128], index: 1, kind: input, shape index: {}]   ;;  %s1191_s0 = inlined_call_operand.vmem [shape: bf16[256,128], index: 0, kind: input, shape index: {}]   ;;  %s1192_s6 = inlined_call_operand.vmem [shape: f32[256,128], index: 6, kind: output, shape index: {}]  }
   0x1   :  { %v663_v0 = vld [vmem:[%s1186_s2 + $0x38] sm:$0xff]  ;;  %v662_v1 = vld [vmem:[%s1186_s2 + $0x30] sm:$0xff]  ;;  %v661_v2 = vld [vmem:[%s1186_s2 + $0x28] sm:$0xff] }
   0x2   :  { %219 = vmatpush.bf16.msra.mxu0 %v663_v0  ;;  %743 = vmatpush.bf16.msra.mxu1 %v663_v0  ;;  %v660_v3 = vld [vmem:[%s1186_s2 + $0x20] sm:$0xff]  ;;  %v659_v4 = vld [vmem:[%s1186_s2 + $0x18] sm:$0xff]  ;;  %v658_v5 = vld [vmem:[%s1186_s2 + $0x10] sm:$0xff] }
   0x3   :  { %744 = vmatpush.bf16.msra.mxu2 %v663_v0  ;;  %745 = vmatpush.bf16.msra.mxu3 %v663_v0  ;;  %v657_v6 = vld [vmem:[%s1186_s2 + $0x8] sm:$0xff]  ;;  %v656_v7 = vld [vmem:[%s1186_s2] sm:$0xff]  ;;  %v642_v16 = vld [vmem:[%s1190_s1 + $0x10] sm:$0xff] }
   0x4   :  { %v640_v8 = vld [vmem:[%s1190_s1] sm:$0xff]  ;;  %v641_v12 = vld [vmem:[%s1190_s1 + $0x8] sm:$0xff]  ;;  %v646_v17 = vld [vmem:[%s1190_s1 + $0x30] sm:$0xff] }
   0x5   :  { %v644_v9 = vld [vmem:[%s1190_s1 + $0x20] sm:$0xff]  ;;  %v645_v13 = vld [vmem:[%s1190_s1 + $0x28] sm:$0xff]  ;;  %v650_v18 = vld [vmem:[%s1190_s1 + $0x50] sm:$0xff] }
   0x6   :  { %220 = vmatpush.bf16.msra.mxu0 %v662_v1  ;;  %746 = vmatpush.bf16.msra.mxu1 %v662_v1  ;;  %v648_v10 = vld [vmem:[%s1190_s1 + $0x40] sm:$0xff]  ;;  %v649_v14 = vld [vmem:[%s1190_s1 + $0x48] sm:$0xff]  ;;  %v654_v19 = vld [vmem:[%s1190_s1 + $0x70] sm:$0xff] }
   0x7   :  { %747 = vmatpush.bf16.msra.mxu2 %v662_v1  ;;  %748 = vmatpush.bf16.msra.mxu3 %v662_v1  ;;  %v652_v11 = vld [vmem:[%s1190_s1 + $0x60] sm:$0xff]  ;;  %v653_v15 = vld [vmem:[%s1190_s1 + $0x68] sm:$0xff]  ;;  %v643_v20 = vld [vmem:[%s1190_s1 + $0x18] sm:$0xff] }
   0x8   :  { %v647_v21 = vld [vmem:[%s1190_s1 + $0x38] sm:$0xff]  ;;  %v665_v24 = vld [vmem:[%s1191_s0] sm:$0xff]   ;;  %v917_v51 = vld [vmem:[%s1191_s0 + $0x8] sm:$0xff]  }
   0x9   :  { %v651_v22 = vld [vmem:[%s1190_s1 + $0x58] sm:$0xff]  ;;  %v731_v25 = vld [vmem:[%s1191_s0 + $0x20] sm:$0xff]   ;;  %v666_v26 = vunpack.c.l.bf16 %v665_v24  ;;  %v667_v39 = vunpack.c.h.bf16 %v665_v24  ;;  %v922_v52 = vld [vmem:[%s1191_s0 + $0x28] sm:$0xff]   ;;  %v670_v63 = vunpack.c.l.bf16 %v917_v51 }
   0xa   :  { %221 = vmatpush.bf16.msra.mxu0 %v661_v2  ;;  %749 = vmatpush.bf16.msra.mxu1 %v661_v2  ;;  %v655_v23 = vld [vmem:[%s1190_s1 + $0x78] sm:$0xff]  ;;  %v886_v27 = vld [vmem:[%s1188_s4] ss:$0 sm:$0xff]  ;;  %v682_v28 = vunpack.c.l.bf16 %v731_v25  ;;  %v683_v40 = vunpack.c.h.bf16 %v731_v25  ;;  %v686_v0 = vunpack.c.l.bf16 %v922_v52 }
   0xb   :  { %750 = vmatpush.bf16.msra.mxu2 %v661_v2  ;;  %751 = vmatpush.bf16.msra.mxu3 %v661_v2  ;;  %v376_v29 = vmul.f32 %v886_v27, %v666_v26  ;;  %v892_v30 = vld [vmem:[%s1189_s5] ss:$0 sm:$0xff]  ;;  %v377_v49 = vmul.f32 %v886_v27, %v667_v39 }
   0xc   :  { %v384_v31 = vmul.f32 %v886_v27, %v682_v28  ;;  %v735_v32 = vld [vmem:[%s1191_s0 + $0x40] sm:$0xff]   ;;  %v385_v50 = vmul.f32 %v886_v27, %v683_v40 }
   0xd   :  { %v739_v33 = vld [vmem:[%s1191_s0 + $0x60] sm:$0xff]   ;;  %v698_v35 = vunpack.c.l.bf16 %v735_v32  ;;  %v412_v37 = vadd.f32 %v892_v30, %v376_v29  ;;  %v699_v57 = vunpack.c.h.bf16 %v735_v32  ;;  %v413_v61 = vadd.f32 %v892_v30, %v377_v49 }
   0xe   :  { %222 = vmatpush.bf16.msra.mxu0 %v660_v3  ;;  %752 = vmatpush.bf16.msra.mxu1 %v660_v3  ;;  %v904_v34 = vld [vmem:[%s1187_s3] ss:$0 sm:$0xff]  ;;  %v714_v36 = vunpack.c.l.bf16 %v739_v33  ;;  %v420_v38 = vadd.f32 %v892_v30, %v384_v31  ;;  %v715_v58 = vunpack.c.h.bf16 %v739_v33  ;;  %v421_v62 = vadd.f32 %v892_v30, %v385_v50  ;;  %v985_v50 = vld [vmem:[%s1191_s0 + $0x10] sm:$0xff]  }
   0xf   :  { %753 = vmatpush.bf16.msra.mxu2 %v660_v3  ;;  %754 = vmatpush.bf16.msra.mxu3 %v660_v3  ;;  %v392_v45 = vmul.f32 %v886_v27, %v698_v35  ;;  %v671_v31 = vunpack.c.h.bf16 %v917_v51  ;;  %v687_v32 = vunpack.c.h.bf16 %v922_v52  ;;  %v990_v51 = vld [vmem:[%s1191_s0 + $0x30] sm:$0xff]  }
  0x10   :  { %v400_v46 = vmul.f32 %v886_v27, %v714_v36 }
  0x11   :  { %v428_v55 = vadd.f32 %v892_v30, %v392_v45 }
  0x12   :  { %223 = vmatpush.bf16.msra.mxu0 %v659_v4  ;;  %755 = vmatpush.bf16.msra.mxu1 %v659_v4  ;;  %v436_v56 = vadd.f32 %v892_v30, %v400_v46  ;;  %v379_v46 = vmul.f32 %v886_v27, %v671_v31 }
  0x13   :  { %756 = vmatpush.bf16.msra.mxu2 %v659_v4  ;;  %757 = vmatpush.bf16.msra.mxu3 %v659_v4 }
  0x16   :  { %224 = vmatpush.bf16.msra.mxu0 %v658_v5  ;;  %758 = vmatpush.bf16.msra.mxu1 %v658_v5 }
  0x17   :  { %759 = vmatpush.bf16.msra.mxu2 %v658_v5  ;;  %760 = vmatpush.bf16.msra.mxu3 %v658_v5 }
  0x1a   :  { %225 = vmatpush.bf16.msra.mxu0 %v657_v6  ;;  %761 = vmatpush.bf16.msra.mxu1 %v657_v6 }
  0x1b   :  { %762 = vmatpush.bf16.msra.mxu2 %v657_v6  ;;  %763 = vmatpush.bf16.msra.mxu3 %v657_v6 }
  0x1e   :  { %226 = vmatpush.bf16.msra.mxu0 %v656_v7  ;;  %764 = vmatpush.bf16.msra.mxu1 %v656_v7 }
  0x1f   :  { %765 = vmatpush.bf16.msra.mxu2 %v656_v7  ;;  %766 = vmatpush.bf16.msra.mxu3 %v656_v7 }
  0x21   :  { %227 = vmatmul.bf16.vlgmr.msra.gmra.mxu0 %v640_v8  ;;  %247 = vmatmul.bf16.vlgmr.msra.gmra.mxu1 %v644_v9  ;;  %v393_v9 = vmul.f32 %v886_v27, %v699_v57 }
  0x22   :  { %267 = vmatmul.bf16.vlgmr.msra.gmra.mxu2 %v648_v10  ;;  %287 = vmatmul.bf16.vlgmr.msra.gmra.mxu3 %v652_v11  ;;  %v401_v10 = vmul.f32 %v886_v27, %v715_v58 }
  0x31   :  { %232 = vmatmul.bf16.gmra.mxu0 %v641_v12  ;;  %252 = vmatmul.bf16.gmra.mxu1 %v645_v13  ;;  %v378_v13 = vmul.f32 %v886_v27, %v670_v63  ;;  %v690_v63 = vunpack.c.l.bf16 %v990_v51 }
  0x32   :  { %272 = vmatmul.bf16.gmra.mxu2 %v649_v14  ;;  %292 = vmatmul.bf16.gmra.mxu3 %v653_v15  ;;  %v386_v14 = vmul.f32 %v886_v27, %v686_v0  ;;  %v947_v15 = vld [vmem:[%s1191_s0 + $0x48] sm:$0xff]  }
  0x33   :  { %v414_v28 = vadd.f32 %v892_v30, %v378_v13 }
  0x34   :  { %v422_v29 = vadd.f32 %v892_v30, %v386_v14 }
  0x41   :  { %237 = vmatmul.bf16.gmra.mxu0 %v642_v16  ;;  %257 = vmatmul.bf16.gmra.mxu1 %v646_v17  ;;  %v952_v16 = vld [vmem:[%s1191_s0 + $0x68] sm:$0xff]  }
  0x42   :  { %277 = vmatmul.bf16.gmra.mxu2 %v650_v18  ;;  %297 = vmatmul.bf16.gmra.mxu3 %v654_v19  ;;  %v718_v24 = vunpack.c.l.bf16 %v952_v16  ;;  %v719_v57 = vunpack.c.h.bf16 %v952_v16 }
  0x51   :  { %242 = vmatmul.bf16.gmra.mxu0 %v643_v20  ;;  %262 = vmatmul.bf16.gmra.mxu1 %v647_v21  ;;  %v429_v21 = vadd.f32 %v892_v30, %v393_v9  ;;  %v403_v9 = vmul.f32 %v886_v27, %v719_v57  ;;  %v1081_v57 = vld [vmem:[%s1191_s0 + $0x18] sm:$0xff]  }
  0x52   :  { %282 = vmatmul.bf16.gmra.mxu2 %v651_v22  ;;  %302 = vmatmul.bf16.gmra.mxu3 %v655_v23  ;;  %v437_v22 = vadd.f32 %v892_v30, %v401_v10  ;;  %v702_v23 = vunpack.c.l.bf16 %v947_v15  ;;  %v1021_v10 = vld [vmem:[%s1191_s0 + $0x50] sm:$0xff]  }
  0x9e   :  { %v228_v41 = vpop.f32.mrf.mxu0  ;;  %v248_v42 = vpop.f32.mrf.mxu1 }
  0x9f   :  { %v229_v43 = vadd.f32 %v904_v34, %v228_v41  ;;  %v249_v44 = vadd.f32 %v904_v34, %v248_v42  ;;  %v394_v42 = vmul.f32 %v886_v27, %v702_v23  ;;  %v1040_v23 = vld [vmem:[%s1191_s0 + $0x78] sm:$0xff]  }
  0xa1   :  { %v444_v47 = vadd.f32 %v412_v37, %v229_v43  ;;  %v452_v48 = vadd.f32 %v420_v38, %v249_v44  ;;  %v402_v43 = vmul.f32 %v886_v27, %v718_v24 }
  0xa3   :  { %v476_v53 = vmax.f32 %v444_v47, 0.0  ;;  %v484_v54 = vmax.f32 %v452_v48, 0.0  ;;  %v387_v47 = vmul.f32 %v886_v27, %v687_v32 }
  0xa5   :  { %508 = vst [vmem:[%s1192_s6] sm:$0xff] %v476_v53  ;;  %v268_v59 = vpop.f32.mrf.mxu2  ;;  %v288_v60 = vpop.f32.mrf.mxu3 }
  0xa6   :  { %516 = vst [vmem:[%s1192_s6 + $0x40] sm:$0xff] %v484_v54  ;;  %v269_v1 = vadd.f32 %v904_v34, %v268_v59  ;;  %v289_v2 = vadd.f32 %v904_v34, %v288_v60  ;;  %v230_v3 = vpop.f32.mrf.mxu0  ;;  %v250_v4 = vpop.f32.mrf.mxu1  ;;  %v430_v54 = vadd.f32 %v892_v30, %v394_v42  ;;  %v415_v60 = vadd.f32 %v892_v30, %v379_v46 }
  0xa7   :  { %v231_v5 = vadd.f32 %v904_v34, %v230_v3  ;;  %v251_v6 = vadd.f32 %v904_v34, %v250_v4 }
  0xa8   :  { %v460_v7 = vadd.f32 %v428_v55, %v269_v1  ;;  %v468_v8 = vadd.f32 %v436_v56, %v289_v2  ;;  %v438_v55 = vadd.f32 %v892_v30, %v402_v43  ;;  %v703_v56 = vunpack.c.h.bf16 %v947_v15 }
  0xa9   :  { %v445_v11 = vadd.f32 %v413_v61, %v231_v5  ;;  %v453_v12 = vadd.f32 %v421_v62, %v251_v6  ;;  %v423_v61 = vadd.f32 %v892_v30, %v387_v47  ;;  %v674_v62 = vunpack.c.l.bf16 %v985_v50 }
  0xaa   :  { %v492_v17 = vmax.f32 %v460_v7, 0.0  ;;  %v500_v18 = vmax.f32 %v468_v8, 0.0  ;;  %v395_v8 = vmul.f32 %v886_v27, %v703_v56  ;;  %v388_v15 = vmul.f32 %v886_v27, %v690_v63 }
  0xab   :  { %v477_v19 = vmax.f32 %v445_v11, 0.0  ;;  %v485_v20 = vmax.f32 %v453_v12, 0.0  ;;  %v1026_v11 = vld [vmem:[%s1191_s0 + $0x70] sm:$0xff]   ;;  %v380_v14 = vmul.f32 %v886_v27, %v674_v62  ;;  %v707_v63 = vunpack.c.h.bf16 %v1021_v10 }
  0xac   :  { %524 = vst [vmem:[%s1192_s6 + $0x80] sm:$0xff] %v492_v17  ;;  %v431_v24 = vadd.f32 %v892_v30, %v395_v8 }
  0xad   :  { %532 = vst [vmem:[%s1192_s6 + $0xc0] sm:$0xff] %v500_v18  ;;  %v270_v25 = vpop.f32.mrf.mxu2  ;;  %v290_v26 = vpop.f32.mrf.mxu3  ;;  %v416_v32 = vadd.f32 %v892_v30, %v380_v14 }
  0xae   :  { %509 = vst [vmem:[%s1192_s6 + $0x8] sm:$0xff] %v477_v19  ;;  %v271_v33 = vadd.f32 %v904_v34, %v270_v25  ;;  %v291_v35 = vadd.f32 %v904_v34, %v290_v26  ;;  %v233_v36 = vpop.f32.mrf.mxu0  ;;  %v253_v37 = vpop.f32.mrf.mxu1  ;;  %v439_v25 = vadd.f32 %v892_v30, %v403_v9 }
  0xaf   :  { %517 = vst [vmem:[%s1192_s6 + $0x48] sm:$0xff] %v485_v20  ;;  %v234_v38 = vadd.f32 %v904_v34, %v233_v36  ;;  %v254_v39 = vadd.f32 %v904_v34, %v253_v37  ;;  %v706_v20 = vunpack.c.l.bf16 %v1021_v10  ;;  %v691_v36 = vunpack.c.h.bf16 %v990_v51 }
  0xb0   :  { %v461_v40 = vadd.f32 %v429_v21, %v271_v33  ;;  %v469_v41 = vadd.f32 %v437_v22, %v291_v35  ;;  %v722_v21 = vunpack.c.l.bf16 %v1026_v11  ;;  %v1035_v22 = vld [vmem:[%s1191_s0 + $0x58] sm:$0xff]   ;;  %v424_v33 = vadd.f32 %v892_v30, %v388_v15 }
  0xb1   :  { %v446_v44 = vadd.f32 %v414_v28, %v234_v38  ;;  %v454_v45 = vadd.f32 %v422_v29, %v254_v39  ;;  %v711_v26 = vunpack.c.h.bf16 %v1035_v22  ;;  %v727_v28 = vunpack.c.h.bf16 %v1040_v23 }
  0xb2   :  { %v493_v48 = vmax.f32 %v461_v40, 0.0  ;;  %v501_v49 = vmax.f32 %v469_v41, 0.0  ;;  %v675_v35 = vunpack.c.h.bf16 %v985_v50  ;;  %v404_v46 = vmul.f32 %v886_v27, %v722_v21 }
  0xb3   :  { %v478_v52 = vmax.f32 %v446_v44, 0.0  ;;  %v486_v53 = vmax.f32 %v454_v45, 0.0  ;;  %v399_v41 = vmul.f32 %v886_v27, %v711_v26  ;;  %v407_v42 = vmul.f32 %v886_v27, %v727_v28 }
  0xb4   :  { %525 = vst [vmem:[%s1192_s6 + $0x88] sm:$0xff] %v493_v48  ;;  %v396_v45 = vmul.f32 %v886_v27, %v706_v20  ;;  %v440_v62 = vadd.f32 %v892_v30, %v404_v46  ;;  %v397_v15 = vmul.f32 %v886_v27, %v707_v63 }
  0xb5   :  { %533 = vst [vmem:[%s1192_s6 + $0xc8] sm:$0xff] %v501_v49  ;;  %v273_v58 = vpop.f32.mrf.mxu2  ;;  %v293_v59 = vpop.f32.mrf.mxu3  ;;  %v1071_v49 = vadd.f32 %v892_v30, %v399_v41  ;;  %v1074_v50 = vadd.f32 %v892_v30, %v407_v42 }
  0xb6   :  { %510 = vst [vmem:[%s1192_s6 + $0x10] sm:$0xff] %v478_v52  ;;  %v274_v0 = vadd.f32 %v904_v34, %v273_v58  ;;  %v294_v1 = vadd.f32 %v904_v34, %v293_v59  ;;  %v235_v2 = vpop.f32.mrf.mxu0  ;;  %v255_v3 = vpop.f32.mrf.mxu1  ;;  %v1086_v58 = vld [vmem:[%s1191_s0 + $0x38] sm:$0xff]   ;;  %v433_v28 = vadd.f32 %v892_v30, %v397_v15 }
  0xb7   :  { %518 = vst [vmem:[%s1192_s6 + $0x50] sm:$0xff] %v486_v53  ;;  %v236_v4 = vadd.f32 %v904_v34, %v235_v2  ;;  %v256_v5 = vadd.f32 %v904_v34, %v255_v3  ;;  %v381_v53 = vmul.f32 %v886_v27, %v675_v35 }
  0xb8   :  { %v462_v6 = vadd.f32 %v430_v54, %v274_v0  ;;  %v470_v7 = vadd.f32 %v438_v55, %v294_v1  ;;  %v389_v54 = vmul.f32 %v886_v27, %v691_v36  ;;  %v723_v0 = vunpack.c.h.bf16 %v1026_v11 }
  0xb9   :  { %v447_v12 = vadd.f32 %v415_v60, %v236_v4  ;;  %v455_v13 = vadd.f32 %v423_v61, %v256_v5  ;;  %v432_v61 = vadd.f32 %v892_v30, %v396_v45  ;;  %v417_v3 = vadd.f32 %v892_v30, %v381_v53 }
  0xba   :  { %v494_v16 = vmax.f32 %v462_v6, 0.0  ;;  %v502_v17 = vmax.f32 %v470_v7, 0.0  ;;  %v425_v4 = vadd.f32 %v892_v30, %v389_v54  ;;  %v678_v5 = vunpack.c.l.bf16 %v1081_v57 }
  0xbb   :  { %v479_v18 = vmax.f32 %v447_v12, 0.0  ;;  %v487_v19 = vmax.f32 %v455_v13, 0.0  ;;  %v694_v6 = vunpack.c.l.bf16 %v1086_v58 }
  0xbc   :  { %526 = vst [vmem:[%s1192_s6 + $0x90] sm:$0xff] %v494_v16  ;;  %v405_v16 = vmul.f32 %v886_v27, %v723_v0 }
  0xbd   :  { %534 = vst [vmem:[%s1192_s6 + $0xd0] sm:$0xff] %v502_v17  ;;  %v275_v29 = vpop.f32.mrf.mxu2  ;;  %v295_v31 = vpop.f32.mrf.mxu3  ;;  %v390_v20 = vmul.f32 %v886_v27, %v694_v6 }
  0xbe   :  { %511 = vst [vmem:[%s1192_s6 + $0x18] sm:$0xff] %v479_v18  ;;  %v276_v37 = vadd.f32 %v904_v34, %v275_v29  ;;  %v296_v38 = vadd.f32 %v904_v34, %v295_v31  ;;  %v238_v39 = vpop.f32.mrf.mxu0  ;;  %v258_v40 = vpop.f32.mrf.mxu1  ;;  %v441_v29 = vadd.f32 %v892_v30, %v405_v16  ;;  %v710_v31 = vunpack.c.l.bf16 %v1035_v22 }
  0xbf   :  { %519 = vst [vmem:[%s1192_s6 + $0x58] sm:$0xff] %v487_v19  ;;  %v239_v43 = vadd.f32 %v904_v34, %v238_v39  ;;  %v259_v44 = vadd.f32 %v904_v34, %v258_v40  ;;  %v382_v19 = vmul.f32 %v886_v27, %v678_v5  ;;  %v695_v39 = vunpack.c.h.bf16 %v1086_v58 }
  0xc0   :  { %v463_v47 = vadd.f32 %v431_v24, %v276_v37  ;;  %v471_v48 = vadd.f32 %v439_v25, %v296_v38  ;;  %v426_v37 = vadd.f32 %v892_v30, %v390_v20  ;;  %v679_v38 = vunpack.c.h.bf16 %v1081_v57 }
  0xc1   :  { %v448_v51 = vadd.f32 %v416_v32, %v239_v43  ;;  %v456_v52 = vadd.f32 %v424_v33, %v259_v44  ;;  %v726_v32 = vunpack.c.l.bf16 %v1040_v23  ;;  %v418_v36 = vadd.f32 %v892_v30, %v382_v19 }
  0xc2   :  { %v495_v55 = vmax.f32 %v463_v47, 0.0  ;;  %v503_v56 = vmax.f32 %v471_v48, 0.0  ;;  %v398_v46 = vmul.f32 %v886_v27, %v710_v31  ;;  %v391_v53 = vmul.f32 %v886_v27, %v695_v39 }
  0xc3   :  { %v480_v59 = vmax.f32 %v448_v51, 0.0  ;;  %v488_v60 = vmax.f32 %v456_v52, 0.0  ;;  %v406_v47 = vmul.f32 %v886_v27, %v726_v32  ;;  %v383_v52 = vmul.f32 %v886_v27, %v679_v38 }
  0xc4   :  { %527 = vst [vmem:[%s1192_s6 + $0x98] sm:$0xff] %v495_v55  ;;  %v434_v58 = vadd.f32 %v892_v30, %v398_v46 }
  0xc5   :  { %535 = vst [vmem:[%s1192_s6 + $0xd8] sm:$0xff] %v503_v56  ;;  %v278_v1 = vpop.f32.mrf.mxu2  ;;  %v298_v2 = vpop.f32.mrf.mxu3  ;;  %v419_v27 = vadd.f32 %v892_v30, %v383_v52 }
  0xc6   :  { %512 = vst [vmem:[%s1192_s6 + $0x20] sm:$0xff] %v480_v59  ;;  %v279_v7 = vadd.f32 %v904_v34, %v278_v1  ;;  %v299_v8 = vadd.f32 %v904_v34, %v298_v2  ;;  %v240_v9 = vpop.f32.mrf.mxu0  ;;  %v260_v10 = vpop.f32.mrf.mxu1  ;;  %v442_v59 = vadd.f32 %v892_v30, %v406_v47 }
  0xc7   :  { %520 = vst [vmem:[%s1192_s6 + $0x60] sm:$0xff] %v488_v60  ;;  %v241_v11 = vadd.f32 %v904_v34, %v240_v9  ;;  %v261_v12 = vadd.f32 %v904_v34, %v260_v10 }
  0xc8   :  { %v464_v13 = vadd.f32 %v432_v61, %v279_v7  ;;  %v472_v14 = vadd.f32 %v440_v62, %v299_v8  ;;  %v427_v62 = vadd.f32 %v892_v30, %v391_v53 }
  0xc9   :  { %v449_v17 = vadd.f32 %v417_v3, %v241_v11  ;;  %v457_v18 = vadd.f32 %v425_v4, %v261_v12 }
  0xca   :  { %v496_v21 = vmax.f32 %v464_v13, 0.0  ;;  %v504_v24 = vmax.f32 %v472_v14, 0.0 }
  0xcb   :  { %v481_v25 = vmax.f32 %v449_v17, 0.0  ;;  %v489_v26 = vmax.f32 %v457_v18, 0.0 }
  0xcc   :  { %528 = vst [vmem:[%s1192_s6 + $0xa0] sm:$0xff] %v496_v21 }
  0xcd   :  { %536 = vst [vmem:[%s1192_s6 + $0xe0] sm:$0xff] %v504_v24  ;;  %v280_v33 = vpop.f32.mrf.mxu2  ;;  %v300_v35 = vpop.f32.mrf.mxu3 }
  0xce   :  { %513 = vst [vmem:[%s1192_s6 + $0x28] sm:$0xff] %v481_v25  ;;  %v281_v22 = vadd.f32 %v904_v34, %v280_v33  ;;  %v301_v23 = vadd.f32 %v904_v34, %v300_v35  ;;  %v243_v40 = vpop.f32.mrf.mxu0  ;;  %v263_v41 = vpop.f32.mrf.mxu1 }
  0xcf   :  { %521 = vst [vmem:[%s1192_s6 + $0x68] sm:$0xff] %v489_v26  ;;  %v244_v42 = vadd.f32 %v904_v34, %v243_v40  ;;  %v264_v43 = vadd.f32 %v904_v34, %v263_v41 }
  0xd0   :  { %v465_v44 = vadd.f32 %v433_v28, %v281_v22  ;;  %v473_v45 = vadd.f32 %v441_v29, %v301_v23 }
  0xd1   :  { %v450_v48 = vadd.f32 %v418_v36, %v244_v42  ;;  %v458_v51 = vadd.f32 %v426_v37, %v264_v43 }
  0xd2   :  { %v497_v54 = vmax.f32 %v465_v44, 0.0  ;;  %v505_v55 = vmax.f32 %v473_v45, 0.0 }
  0xd3   :  { %v482_v56 = vmax.f32 %v450_v48, 0.0  ;;  %v490_v57 = vmax.f32 %v458_v51, 0.0 }
  0xd4   :  { %529 = vst [vmem:[%s1192_s6 + $0xa8] sm:$0xff] %v497_v54 }
  0xd5   :  { %537 = vst [vmem:[%s1192_s6 + $0xe8] sm:$0xff] %v505_v55  ;;  %v283_v60 = vpop.f32.mrf.mxu2  ;;  %v303_v61 = vpop.f32.mrf.mxu3 }
  0xd6   :  { %514 = vst [vmem:[%s1192_s6 + $0x30] sm:$0xff] %v482_v56  ;;  %v284_v63 = vadd.f32 %v904_v34, %v283_v60  ;;  %v304_v0 = vadd.f32 %v904_v34, %v303_v61  ;;  %v245_v1 = vpop.f32.mrf.mxu0  ;;  %v265_v2 = vpop.f32.mrf.mxu1 }
  0xd7   :  { %522 = vst [vmem:[%s1192_s6 + $0x70] sm:$0xff] %v490_v57  ;;  %v246_v3 = vadd.f32 %v904_v34, %v245_v1  ;;  %v266_v4 = vadd.f32 %v904_v34, %v265_v2 }
  0xd8   :  { %v466_v5 = vadd.f32 %v434_v58, %v284_v63  ;;  %v474_v30 = vadd.f32 %v442_v59, %v304_v0 }
  0xd9   :  { %v451_v6 = vadd.f32 %v419_v27, %v246_v3  ;;  %v459_v7 = vadd.f32 %v427_v62, %v266_v4 }
  0xda   :  { %v498_v8 = vmax.f32 %v466_v5, 0.0  ;;  %v506_v9 = vmax.f32 %v474_v30, 0.0 }
  0xdb   :  { %v483_v10 = vmax.f32 %v451_v6, 0.0  ;;  %v491_v11 = vmax.f32 %v459_v7, 0.0 }
  0xdc   :  { %530 = vst [vmem:[%s1192_s6 + $0xb0] sm:$0xff] %v498_v8 }
  0xdd   :  { %538 = vst [vmem:[%s1192_s6 + $0xf0] sm:$0xff] %v506_v9  ;;  %v285_v12 = vpop.f32.mrf.mxu2  ;;  %v305_v13 = vpop.f32.mrf.mxu3 }
  0xde   :  { %515 = vst [vmem:[%s1192_s6 + $0x38] sm:$0xff] %v483_v10  ;;  %v286_v14 = vadd.f32 %v904_v34, %v285_v12  ;;  %v306_v15 = vadd.f32 %v904_v34, %v305_v13 }
  0xdf   :  { %523 = vst [vmem:[%s1192_s6 + $0x78] sm:$0xff] %v491_v11 }
  0xe0   :  { %v467_v16 = vadd.f32 %v1071_v49, %v286_v14  ;;  %v475_v17 = vadd.f32 %v1074_v50, %v306_v15 }
  0xe2   :  { %v499_v18 = vmax.f32 %v467_v16, 0.0  ;;  %v507_v19 = vmax.f32 %v475_v17, 0.0 }
  0xe4   :  { %531 = vst [vmem:[%s1192_s6 + $0xb8] sm:$0xff] %v499_v18 }
  0xe5   :  { %539 = vst [vmem:[%s1192_s6 + $0xf8] sm:$0xff] %v507_v19 }

</bundles_post_ra>
